<compile_context>
chip_gen: v6e
topology: v6e:2x2x1
jax: 0.10.0
libtpu: 0.0.40
codegen_flags: <defaults>
</compile_context>

<pallas_src>
import functools

import numpy as np

import jax
import jax.numpy as jnp
from jax.experimental import pallas as pl
from jax.experimental.pallas import tpu as pltpu


# ---------------------------------------------------------------------------
# Fused Pallas kernel: conv1+relu+pool1+conv2+relu+pool2+conv3+relu+fc1+fc2
# ---------------------------------------------------------------------------
def _lenet5_kernel(x_ref,
                   w1_ref, b1_ref, w2_ref, b2_ref, w3_ref, b3_ref,
                   w4_ref, b4_ref, w5_ref, b5_ref,
                   selr1_ref, selc1_ref, selr2_ref, selc2_ref,
                   out_ref, feat_ref):
    f32 = jnp.float32

    def mm(a, b):
        return jnp.dot(a, b, preferred_element_type=f32)

    def conv5x5_relu(x, w_ref, b_ref, ho, no):
        # x: (Hi, Cin*Wi) channel-major layout; w_ref: (5, Cin*Wi, Cout*Wo)
        # Toeplitz bands (one per kernel row).  Result: (ho, no) = (Ho, Cout*Wo).
        acc = jnp.zeros((ho, no), f32)
        for i in range(5):                       # unrolled: 5 MXU matmuls
            acc = acc + mm(x[i:i + ho, :], w_ref[i])
        return jnp.maximum(acc + b_ref[...], 0.0)

    def maxpool2x2(y, selr_ref, selc_ref):
        # Row-pair max via even/odd row-selection matmuls, then column-pair
        # max via even/odd column-selection matmuls; layout stays (H, C*W).
        r = jnp.maximum(mm(selr_ref[0], y), mm(selr_ref[1], y))
        return jnp.maximum(mm(r, selc_ref[0]), mm(r, selc_ref[1]))

    x = x_ref[0, 0]                                       # (32, 32)   Cin=1
    y1 = conv5x5_relu(x, w1_ref, b1_ref, 28, 6 * 28)      # (28, 168)
    p1 = maxpool2x2(y1, selr1_ref, selc1_ref)             # (14, 84)
    y2 = conv5x5_relu(p1, w2_ref, b2_ref, 10, 16 * 10)    # (10, 160)
    p2 = maxpool2x2(y2, selr2_ref, selc2_ref)             # (5, 80)
    feat = conv5x5_relu(p2, w3_ref, b3_ref, 1, 120)       # (1, 120)
    feat_ref[0] = feat
    h = jnp.maximum(mm(feat, w4_ref[...]) + b4_ref[...], 0.0)   # (1, 84)
    out_ref[0] = mm(h, w5_ref[...]) + b5_ref[...]               # (1, 10)


# ---------------------------------------------------------------------------
# One-time parameter packing (hoisted out of the forward pass)
# ---------------------------------------------------------------------------
def _conv_toeplitz(w, wi):
    """PyTorch conv weight (Cout, Cin, 5, 5) -> (5, Cin*wi, Cout*wo) bands.

    T[i, ci*wi + u, co*wo + w] = w[co, ci, i, u - w]  for 0 <= u - w < 5 else 0,
    so that conv = sum_i  X[h+i, :] @ T[i]  with feature maps in (H, C*W) layout.
    """
    w = np.asarray(w, np.float32)
    cout, cin, kh, kw = w.shape
    wo = wi - kw + 1
    j = np.arange(wi)[:, None] - np.arange(wo)[None, :]           # (wi, wo)
    valid = (j >= 0) & (j < kw)
    t = w[:, :, :, np.where(valid, j, 0)] * valid                 # (Cout,Cin,5,wi,wo)
    t = np.transpose(t, (2, 1, 3, 0, 4)).reshape(kh, cin * wi, cout * wo)
    return jnp.asarray(t)


def _pool_selectors(h, w, c):
    """0/1 selection matrices implementing 2x2/stride-2 max-pool in (H, C*W)."""
    hp, wp = h // 2, w // 2
    rows = np.zeros((2, hp, h), np.float32)
    r = np.arange(hp)
    rows[0, r, 2 * r] = 1.0
    rows[1, r, 2 * r + 1] = 1.0
    cols = np.zeros((2, c * w, c * wp), np.float32)
    v = np.arange(c * wp)
    u0 = (v // wp) * w + 2 * (v % wp)
    cols[0, u0, v] = 1.0
    cols[1, u0 + 1, v] = 1.0
    return jnp.asarray(rows), jnp.asarray(cols)


def _row(b):
    return jnp.asarray(np.asarray(b, np.float32)[None, :])


def pack_lenet5_params(params):
    """Re-layout PyTorch-convention params for the fused kernel (run once)."""
    w1, b1 = params["conv1"]
    w2, b2 = params["conv2"]
    w3, b3 = params["conv3"]
    w4, b4 = params["fc1"]
    w5, b5 = params["fc2"]
    selr1, selc1 = _pool_selectors(28, 28, 6)
    selr2, selc2 = _pool_selectors(10, 10, 16)
    return {
        "w1": _conv_toeplitz(w1, 32),
        "b1": _row(np.repeat(np.asarray(b1, np.float32), 28)),
        "w2": _conv_toeplitz(w2, 14),
        "b2": _row(np.repeat(np.asarray(b2, np.float32), 10)),
        "w3": _conv_toeplitz(w3, 5),
        "b3": _row(b3),
        "w4": jnp.asarray(np.asarray(w4, np.float32).T),
        "b4": _row(b4),
        "w5": jnp.asarray(np.asarray(w5, np.float32).T),
        "b5": _row(b5),
        "selr1": selr1, "selc1": selc1, "selr2": selr2, "selc2": selc2,
    }


_PARAM_ORDER = ("w1", "b1", "w2", "b2", "w3", "b3", "w4", "b4", "w5", "b5",
                "selr1", "selc1", "selr2", "selc2")


# ---------------------------------------------------------------------------
# Forward pass (single pallas_call)
# ---------------------------------------------------------------------------
def lenet5_forward(packed, img, out_feature=False):
    """img: (B, 1, 32, 32) float32, NCHW (PyTorch convention)."""
    B = img.shape[0]
    assert img.shape[1:] == (1, 32, 32)
    x = img.astype(jnp.float32)
    consts = tuple(packed[k] for k in _PARAM_ORDER)

    in_specs = [pl.BlockSpec((1, 1, 32, 32), lambda b: (b, 0, 0, 0))]
    for a in consts:   # tiny constant tensors: whole array resident in VMEM
        in_specs.append(pl.BlockSpec(a.shape, lambda b, _n=a.ndim: (0,) * _n))

    logits, feat = pl.pallas_call(
        _lenet5_kernel,
        out_shape=(jax.ShapeDtypeStruct((B, 1, 10), jnp.float32),
                   jax.ShapeDtypeStruct((B, 1, 120), jnp.float32)),
        grid=(B,),
        in_specs=in_specs,
        out_specs=(pl.BlockSpec((1, 1, 10), lambda b: (b, 0, 0)),
                   pl.BlockSpec((1, 1, 120), lambda b: (b, 0, 0))),
        compiler_params=pltpu.CompilerParams(
            dimension_semantics=("parallel",)),
    )(x, *consts)

    logits = logits.reshape(B, 10)
    if not out_feature:
        return logits
    return logits, feat.reshape(B, 120)


# ---------------------------------------------------------------------------
# Parameter init (PyTorch-style) and pure-XLA reference for self-checking
# ---------------------------------------------------------------------------
def init_lenet5_params(key):
    """Deterministic init mimicking PyTorch's default uniform(+-1/sqrt(fan_in))."""
    def conv_init(k, cout, cin, ksz):
        k1, k2 = jax.random.split(k)
        bound = 1.0 / (cin * ksz * ksz) ** 0.5
        w = jax.random.uniform(k1, (cout, cin, ksz, ksz), jnp.float32, -bound, bound)
        b = jax.random.uniform(k2, (cout,), jnp.float32, -bound, bound)
        return w, b

    def lin_init(k, out_f, in_f):
        k1, k2 = jax.random.split(k)
        bound = 1.0 / in_f ** 0.5
        w = jax.random.uniform(k1, (out_f, in_f), jnp.float32, -bound, bound)
        b = jax.random.uniform(k2, (out_f,), jnp.float32, -bound, bound)
        return w, b

    keys = jax.random.split(key, 5)
    return {
        "conv1": conv_init(keys[0], 6, 1, 5),
        "conv2": conv_init(keys[1], 16, 6, 5),
        "conv3": conv_init(keys[2], 120, 16, 5),
        "fc1": lin_init(keys[3], 84, 120),
        "fc2": lin_init(keys[4], 10, 84),
    }


def _reference_forward(params, img):
    """Pure-XLA reference (no Pallas), used only for correctness checking."""
    hi = jax.lax.Precision.HIGHEST

    def conv_relu(x, w, b):
        y = jax.lax.conv_general_dilated(
            x, w, (1, 1), "VALID",
            dimension_numbers=("NCHW", "OIHW", "NCHW"), precision=hi)
        return jax.nn.relu(y + b[None, :, None, None])

    def pool(x):
        return jax.lax.reduce_window(x, -jnp.inf, jax.lax.max,
                                     (1, 1, 2, 2), (1, 1, 2, 2), "VALID")

    x = pool(conv_relu(img, *params["conv1"]))
    x = pool(conv_relu(x, *params["conv2"]))
    feat = conv_relu(x, *params["conv3"]).reshape(-1, 120)
    w4, b4 = params["fc1"]
    w5, b5 = params["fc2"]
    h = jax.nn.relu(jnp.dot(feat, w4.T, precision=hi) + b4)
    return jnp.dot(h, w5.T, precision=hi) + b5, feat


if __name__ == "__main__":
    key = jax.random.PRNGKey(0)
    pkey, xkey = jax.random.split(key)
    params = init_lenet5_params(pkey)
    packed = pack_lenet5_params(params)           # one-time weight re-layout

    # LeNet-5 requires 32x32 single-channel input for view(-1, 120) to hold.
    img = jax.random.normal(xkey, (2, 1, 32, 32), dtype=jnp.float32)

    fwd = jax.jit(functools.partial(lenet5_forward, out_feature=True))
    logits, feature = fwd(packed, img)
    jax.block_until_ready((logits, feature))
    assert logits.shape == (2, 10) and feature.shape == (2, 120)

    ref_logits, ref_feature = _reference_forward(params, img)
    np.testing.assert_allclose(np.asarray(logits), np.asarray(ref_logits),
                               rtol=1e-2, atol=1e-2)
    np.testing.assert_allclose(np.asarray(feature), np.asarray(ref_feature),
                               rtol=1e-2, atol=1e-2)
    print("KERNEL_OK")
</pallas_src>

<mosaic_0001>
module attributes {stable_mosaic.version = 11 : i64} {
  func.func @_lenet5_kernel(%arg0: i32, %arg1: memref<1x1x32x32xf32, #tpu.memory_space<vmem>>, %arg2: memref<5x32x168xf32, #tpu.memory_space<vmem>>, %arg3: memref<1x168xf32, #tpu.memory_space<vmem>>, %arg4: memref<5x84x160xf32, #tpu.memory_space<vmem>>, %arg5: memref<1x160xf32, #tpu.memory_space<vmem>>, %arg6: memref<5x80x120xf32, #tpu.memory_space<vmem>>, %arg7: memref<1x120xf32, #tpu.memory_space<vmem>>, %arg8: memref<120x84xf32, #tpu.memory_space<vmem>>, %arg9: memref<1x84xf32, #tpu.memory_space<vmem>>, %arg10: memref<84x10xf32, #tpu.memory_space<vmem>>, %arg11: memref<1x10xf32, #tpu.memory_space<vmem>>, %arg12: memref<2x14x28xf32, #tpu.memory_space<vmem>>, %arg13: memref<2x168x84xf32, #tpu.memory_space<vmem>>, %arg14: memref<2x5x10xf32, #tpu.memory_space<vmem>>, %arg15: memref<2x160x80xf32, #tpu.memory_space<vmem>>, %arg16: memref<1x1x10xf32, #tpu.memory_space<vmem>>, %arg17: memref<1x1x120xf32, #tpu.memory_space<vmem>>) attributes {dimension_semantics = [#tpu.dimension_semantics<parallel>], iteration_bounds = array<i64: 2>, scalar_prefetch = 0 : i64, scratch_operands = 0 : i64, tpu.core_type = #tpu.core_type<tc>, window_params = [{transform_indices = @transform_0, window_bounds = array<i64: 1, 1, 32, 32>}, {pipeline_mode = #tpu.pipeline_mode<synchronous>, transform_indices = @transform_1, window_bounds = array<i64: 5, 32, 168>}, {pipeline_mode = #tpu.pipeline_mode<synchronous>, transform_indices = @transform_2, window_bounds = array<i64: 1, 168>}, {pipeline_mode = #tpu.pipeline_mode<synchronous>, transform_indices = @transform_3, window_bounds = array<i64: 5, 84, 160>}, {pipeline_mode = #tpu.pipeline_mode<synchronous>, transform_indices = @transform_4, window_bounds = array<i64: 1, 160>}, {pipeline_mode = #tpu.pipeline_mode<synchronous>, transform_indices = @transform_5, window_bounds = array<i64: 5, 80, 120>}, {pipeline_mode = #tpu.pipeline_mode<synchronous>, transform_indices = @transform_6, window_bounds = array<i64: 1, 120>}, {pipeline_mode = #tpu.pipeline_mode<synchronous>, transform_indices = @transform_7, window_bounds = array<i64: 120, 84>}, {pipeline_mode = #tpu.pipeline_mode<synchronous>, transform_indices = @transform_8, window_bounds = array<i64: 1, 84>}, {pipeline_mode = #tpu.pipeline_mode<synchronous>, transform_indices = @transform_9, window_bounds = array<i64: 84, 10>}, {pipeline_mode = #tpu.pipeline_mode<synchronous>, transform_indices = @transform_10, window_bounds = array<i64: 1, 10>}, {pipeline_mode = #tpu.pipeline_mode<synchronous>, transform_indices = @transform_11, window_bounds = array<i64: 2, 14, 28>}, {pipeline_mode = #tpu.pipeline_mode<synchronous>, transform_indices = @transform_12, window_bounds = array<i64: 2, 168, 84>}, {pipeline_mode = #tpu.pipeline_mode<synchronous>, transform_indices = @transform_13, window_bounds = array<i64: 2, 5, 10>}, {pipeline_mode = #tpu.pipeline_mode<synchronous>, transform_indices = @transform_14, window_bounds = array<i64: 2, 160, 80>}, {transform_indices = @transform_15, window_bounds = array<i64: 1, 1, 10>}, {transform_indices = @transform_16, window_bounds = array<i64: 1, 1, 120>}]} {
    %c0 = arith.constant 0 : index
    %c0_0 = arith.constant 0 : index
    %c0_1 = arith.constant 0 : index
    %c0_2 = arith.constant 0 : index
    %0 = vector.load %arg1[%c0, %c0_0, %c0_1, %c0_2] : memref<1x1x32x32xf32, #tpu.memory_space<vmem>>, vector<1x1x32x32xf32>
    %1 = vector.shape_cast %0 : vector<1x1x32x32xf32> to vector<32x32xf32>
    %cst = arith.constant 0.000000e+00 : f32
    %2 = vector.broadcast %cst : f32 to vector<28x168xf32>
    %3 = vector.extract_strided_slice %1 {offsets = [0, 0], sizes = [28, 32], strides = [1, 1]} : vector<32x32xf32> to vector<28x32xf32>
    %c0_3 = arith.constant 0 : index
    %c0_4 = arith.constant 0 : index
    %c0_5 = arith.constant 0 : index
    %4 = vector.load %arg2[%c0_3, %c0_4, %c0_5] : memref<5x32x168xf32, #tpu.memory_space<vmem>>, vector<1x32x168xf32>
    %5 = vector.shape_cast %4 : vector<1x32x168xf32> to vector<32x168xf32>
    %cst_6 = arith.constant dense<0.000000e+00> : vector<28x168xf32>
    %6 = tpu.matmul %3, %5, %cst_6 {dimension_numbers = #tpu.dot_dimension_numbers<[1], [0], [0], [1], [0, 0, 1, 1], [], []>} : vector<28x32xf32>, vector<32x168xf32>, vector<28x168xf32> -> vector<28x168xf32>
    %7 = arith.addf %2, %6 : vector<28x168xf32>
    %8 = vector.extract_strided_slice %1 {offsets = [1, 0], sizes = [28, 32], strides = [1, 1]} : vector<32x32xf32> to vector<28x32xf32>
    %c1 = arith.constant 1 : index
    %c0_7 = arith.constant 0 : index
    %c0_8 = arith.constant 0 : index
    %9 = vector.load %arg2[%c1, %c0_7, %c0_8] : memref<5x32x168xf32, #tpu.memory_space<vmem>>, vector<1x32x168xf32>
    %10 = vector.shape_cast %9 : vector<1x32x168xf32> to vector<32x168xf32>
    %cst_9 = arith.constant dense<0.000000e+00> : vector<28x168xf32>
    %11 = tpu.matmul %8, %10, %cst_9 {dimension_numbers = #tpu.dot_dimension_numbers<[1], [0], [0], [1], [0, 0, 1, 1], [], []>} : vector<28x32xf32>, vector<32x168xf32>, vector<28x168xf32> -> vector<28x168xf32>
    %12 = arith.addf %7, %11 : vector<28x168xf32>
    %13 = vector.extract_strided_slice %1 {offsets = [2, 0], sizes = [28, 32], strides = [1, 1]} : vector<32x32xf32> to vector<28x32xf32>
    %c2 = arith.constant 2 : index
    %c0_10 = arith.constant 0 : index
    %c0_11 = arith.constant 0 : index
    %14 = vector.load %arg2[%c2, %c0_10, %c0_11] : memref<5x32x168xf32, #tpu.memory_space<vmem>>, vector<1x32x168xf32>
    %15 = vector.shape_cast %14 : vector<1x32x168xf32> to vector<32x168xf32>
    %cst_12 = arith.constant dense<0.000000e+00> : vector<28x168xf32>
    %16 = tpu.matmul %13, %15, %cst_12 {dimension_numbers = #tpu.dot_dimension_numbers<[1], [0], [0], [1], [0, 0, 1, 1], [], []>} : vector<28x32xf32>, vector<32x168xf32>, vector<28x168xf32> -> vector<28x168xf32>
    %17 = arith.addf %12, %16 : vector<28x168xf32>
    %18 = vector.extract_strided_slice %1 {offsets = [3, 0], sizes = [28, 32], strides = [1, 1]} : vector<32x32xf32> to vector<28x32xf32>
    %c3 = arith.constant 3 : index
    %c0_13 = arith.constant 0 : index
    %c0_14 = arith.constant 0 : index
    %19 = vector.load %arg2[%c3, %c0_13, %c0_14] : memref<5x32x168xf32, #tpu.memory_space<vmem>>, vector<1x32x168xf32>
    %20 = vector.shape_cast %19 : vector<1x32x168xf32> to vector<32x168xf32>
    %cst_15 = arith.constant dense<0.000000e+00> : vector<28x168xf32>
    %21 = tpu.matmul %18, %20, %cst_15 {dimension_numbers = #tpu.dot_dimension_numbers<[1], [0], [0], [1], [0, 0, 1, 1], [], []>} : vector<28x32xf32>, vector<32x168xf32>, vector<28x168xf32> -> vector<28x168xf32>
    %22 = arith.addf %17, %21 : vector<28x168xf32>
    %23 = vector.extract_strided_slice %1 {offsets = [4, 0], sizes = [28, 32], strides = [1, 1]} : vector<32x32xf32> to vector<28x32xf32>
    %c4 = arith.constant 4 : index
    %c0_16 = arith.constant 0 : index
    %c0_17 = arith.constant 0 : index
    %24 = vector.load %arg2[%c4, %c0_16, %c0_17] : memref<5x32x168xf32, #tpu.memory_space<vmem>>, vector<1x32x168xf32>
    %25 = vector.shape_cast %24 : vector<1x32x168xf32> to vector<32x168xf32>
    %cst_18 = arith.constant dense<0.000000e+00> : vector<28x168xf32>
    %26 = tpu.matmul %23, %25, %cst_18 {dimension_numbers = #tpu.dot_dimension_numbers<[1], [0], [0], [1], [0, 0, 1, 1], [], []>} : vector<28x32xf32>, vector<32x168xf32>, vector<28x168xf32> -> vector<28x168xf32>
    %27 = arith.addf %22, %26 : vector<28x168xf32>
    %c0_19 = arith.constant 0 : index
    %c0_20 = arith.constant 0 : index
    %28 = vector.load %arg3[%c0_19, %c0_20] : memref<1x168xf32, #tpu.memory_space<vmem>>, vector<1x168xf32>
    %29 = vector.broadcast %28 : vector<1x168xf32> to vector<28x168xf32>
    %30 = arith.addf %27, %29 : vector<28x168xf32>
    %cst_21 = arith.constant 0.000000e+00 : f32
    %31 = vector.broadcast %cst_21 : f32 to vector<28x168xf32>
    %32 = arith.maximumf %30, %31 : vector<28x168xf32>
    %c0_22 = arith.constant 0 : index
    %c0_23 = arith.constant 0 : index
    %c0_24 = arith.constant 0 : index
    %33 = vector.load %arg12[%c0_22, %c0_23, %c0_24] : memref<2x14x28xf32, #tpu.memory_space<vmem>>, vector<1x14x28xf32>
    %34 = vector.shape_cast %33 : vector<1x14x28xf32> to vector<14x28xf32>
    %cst_25 = arith.constant dense<0.000000e+00> : vector<14x168xf32>
    %35 = tpu.matmul %34, %32, %cst_25 {dimension_numbers = #tpu.dot_dimension_numbers<[1], [0], [0], [1], [0, 0, 1, 1], [], []>} : vector<14x28xf32>, vector<28x168xf32>, vector<14x168xf32> -> vector<14x168xf32>
    %c1_26 = arith.constant 1 : index
    %c0_27 = arith.constant 0 : index
    %c0_28 = arith.constant 0 : index
    %36 = vector.load %arg12[%c1_26, %c0_27, %c0_28] : memref<2x14x28xf32, #tpu.memory_space<vmem>>, vector<1x14x28xf32>
    %37 = vector.shape_cast %36 : vector<1x14x28xf32> to vector<14x28xf32>
    %cst_29 = arith.constant dense<0.000000e+00> : vector<14x168xf32>
    %38 = tpu.matmul %37, %32, %cst_29 {dimension_numbers = #tpu.dot_dimension_numbers<[1], [0], [0], [1], [0, 0, 1, 1], [], []>} : vector<14x28xf32>, vector<28x168xf32>, vector<14x168xf32> -> vector<14x168xf32>
    %39 = arith.maximumf %35, %38 : vector<14x168xf32>
    %c0_30 = arith.constant 0 : index
    %c0_31 = arith.constant 0 : index
    %c0_32 = arith.constant 0 : index
    %40 = vector.load %arg13[%c0_30, %c0_31, %c0_32] : memref<2x168x84xf32, #tpu.memory_space<vmem>>, vector<1x168x84xf32>
    %41 = vector.shape_cast %40 : vector<1x168x84xf32> to vector<168x84xf32>
    %cst_33 = arith.constant dense<0.000000e+00> : vector<14x84xf32>
    %42 = tpu.matmul %39, %41, %cst_33 {dimension_numbers = #tpu.dot_dimension_numbers<[1], [0], [0], [1], [0, 0, 1, 1], [], []>} : vector<14x168xf32>, vector<168x84xf32>, vector<14x84xf32> -> vector<14x84xf32>
    %c1_34 = arith.constant 1 : index
    %c0_35 = arith.constant 0 : index
    %c0_36 = arith.constant 0 : index
    %43 = vector.load %arg13[%c1_34, %c0_35, %c0_36] : memref<2x168x84xf32, #tpu.memory_space<vmem>>, vector<1x168x84xf32>
    %44 = vector.shape_cast %43 : vector<1x168x84xf32> to vector<168x84xf32>
    %cst_37 = arith.constant dense<0.000000e+00> : vector<14x84xf32>
    %45 = tpu.matmul %39, %44, %cst_37 {dimension_numbers = #tpu.dot_dimension_numbers<[1], [0], [0], [1], [0, 0, 1, 1], [], []>} : vector<14x168xf32>, vector<168x84xf32>, vector<14x84xf32> -> vector<14x84xf32>
    %46 = arith.maximumf %42, %45 : vector<14x84xf32>
    %cst_38 = arith.constant 0.000000e+00 : f32
    %47 = vector.broadcast %cst_38 : f32 to vector<10x160xf32>
    %48 = vector.extract_strided_slice %46 {offsets = [0, 0], sizes = [10, 84], strides = [1, 1]} : vector<14x84xf32> to vector<10x84xf32>
    %c0_39 = arith.constant 0 : index
    %c0_40 = arith.constant 0 : index
    %c0_41 = arith.constant 0 : index
    %49 = vector.load %arg4[%c0_39, %c0_40, %c0_41] : memref<5x84x160xf32, #tpu.memory_space<vmem>>, vector<1x84x160xf32>
    %50 = vector.shape_cast %49 : vector<1x84x160xf32> to vector<84x160xf32>
    %cst_42 = arith.constant dense<0.000000e+00> : vector<10x160xf32>
    %51 = tpu.matmul %48, %50, %cst_42 {dimension_numbers = #tpu.dot_dimension_numbers<[1], [0], [0], [1], [0, 0, 1, 1], [], []>} : vector<10x84xf32>, vector<84x160xf32>, vector<10x160xf32> -> vector<10x160xf32>
    %52 = arith.addf %47, %51 : vector<10x160xf32>
    %53 = vector.extract_strided_slice %46 {offsets = [1, 0], sizes = [10, 84], strides = [1, 1]} : vector<14x84xf32> to vector<10x84xf32>
    %c1_43 = arith.constant 1 : index
    %c0_44 = arith.constant 0 : index
    %c0_45 = arith.constant 0 : index
    %54 = vector.load %arg4[%c1_43, %c0_44, %c0_45] : memref<5x84x160xf32, #tpu.memory_space<vmem>>, vector<1x84x160xf32>
    %55 = vector.shape_cast %54 : vector<1x84x160xf32> to vector<84x160xf32>
    %cst_46 = arith.constant dense<0.000000e+00> : vector<10x160xf32>
    %56 = tpu.matmul %53, %55, %cst_46 {dimension_numbers = #tpu.dot_dimension_numbers<[1], [0], [0], [1], [0, 0, 1, 1], [], []>} : vector<10x84xf32>, vector<84x160xf32>, vector<10x160xf32> -> vector<10x160xf32>
    %57 = arith.addf %52, %56 : vector<10x160xf32>
    %58 = vector.extract_strided_slice %46 {offsets = [2, 0], sizes = [10, 84], strides = [1, 1]} : vector<14x84xf32> to vector<10x84xf32>
    %c2_47 = arith.constant 2 : index
    %c0_48 = arith.constant 0 : index
    %c0_49 = arith.constant 0 : index
    %59 = vector.load %arg4[%c2_47, %c0_48, %c0_49] : memref<5x84x160xf32, #tpu.memory_space<vmem>>, vector<1x84x160xf32>
    %60 = vector.shape_cast %59 : vector<1x84x160xf32> to vector<84x160xf32>
    %cst_50 = arith.constant dense<0.000000e+00> : vector<10x160xf32>
    %61 = tpu.matmul %58, %60, %cst_50 {dimension_numbers = #tpu.dot_dimension_numbers<[1], [0], [0], [1], [0, 0, 1, 1], [], []>} : vector<10x84xf32>, vector<84x160xf32>, vector<10x160xf32> -> vector<10x160xf32>
    %62 = arith.addf %57, %61 : vector<10x160xf32>
    %63 = vector.extract_strided_slice %46 {offsets = [3, 0], sizes = [10, 84], strides = [1, 1]} : vector<14x84xf32> to vector<10x84xf32>
    %c3_51 = arith.constant 3 : index
    %c0_52 = arith.constant 0 : index
    %c0_53 = arith.constant 0 : index
    %64 = vector.load %arg4[%c3_51, %c0_52, %c0_53] : memref<5x84x160xf32, #tpu.memory_space<vmem>>, vector<1x84x160xf32>
    %65 = vector.shape_cast %64 : vector<1x84x160xf32> to vector<84x160xf32>
    %cst_54 = arith.constant dense<0.000000e+00> : vector<10x160xf32>
    %66 = tpu.matmul %63, %65, %cst_54 {dimension_numbers = #tpu.dot_dimension_numbers<[1], [0], [0], [1], [0, 0, 1, 1], [], []>} : vector<10x84xf32>, vector<84x160xf32>, vector<10x160xf32> -> vector<10x160xf32>
    %67 = arith.addf %62, %66 : vector<10x160xf32>
    %68 = vector.extract_strided_slice %46 {offsets = [4, 0], sizes = [10, 84], strides = [1, 1]} : vector<14x84xf32> to vector<10x84xf32>
    %c4_55 = arith.constant 4 : index
    %c0_56 = arith.constant 0 : index
    %c0_57 = arith.constant 0 : index
    %69 = vector.load %arg4[%c4_55, %c0_56, %c0_57] : memref<5x84x160xf32, #tpu.memory_space<vmem>>, vector<1x84x160xf32>
    %70 = vector.shape_cast %69 : vector<1x84x160xf32> to vector<84x160xf32>
    %cst_58 = arith.constant dense<0.000000e+00> : vector<10x160xf32>
    %71 = tpu.matmul %68, %70, %cst_58 {dimension_numbers = #tpu.dot_dimension_numbers<[1], [0], [0], [1], [0, 0, 1, 1], [], []>} : vector<10x84xf32>, vector<84x160xf32>, vector<10x160xf32> -> vector<10x160xf32>
    %72 = arith.addf %67, %71 : vector<10x160xf32>
    %c0_59 = arith.constant 0 : index
    %c0_60 = arith.constant 0 : index
    %73 = vector.load %arg5[%c0_59, %c0_60] : memref<1x160xf32, #tpu.memory_space<vmem>>, vector<1x160xf32>
    %74 = vector.broadcast %73 : vector<1x160xf32> to vector<10x160xf32>
    %75 = arith.addf %72, %74 : vector<10x160xf32>
    %cst_61 = arith.constant 0.000000e+00 : f32
    %76 = vector.broadcast %cst_61 : f32 to vector<10x160xf32>
    %77 = arith.maximumf %75, %76 : vector<10x160xf32>
    %c0_62 = arith.constant 0 : index
    %c0_63 = arith.constant 0 : index
    %c0_64 = arith.constant 0 : index
    %78 = vector.load %arg14[%c0_62, %c0_63, %c0_64] : memref<2x5x10xf32, #tpu.memory_space<vmem>>, vector<1x5x10xf32>
    %79 = vector.shape_cast %78 : vector<1x5x10xf32> to vector<5x10xf32>
    %cst_65 = arith.constant dense<0.000000e+00> : vector<5x160xf32>
    %80 = tpu.matmul %79, %77, %cst_65 {dimension_numbers = #tpu.dot_dimension_numbers<[1], [0], [0], [1], [0, 0, 1, 1], [], []>} : vector<5x10xf32>, vector<10x160xf32>, vector<5x160xf32> -> vector<5x160xf32>
    %c1_66 = arith.constant 1 : index
    %c0_67 = arith.constant 0 : index
    %c0_68 = arith.constant 0 : index
    %81 = vector.load %arg14[%c1_66, %c0_67, %c0_68] : memref<2x5x10xf32, #tpu.memory_space<vmem>>, vector<1x5x10xf32>
    %82 = vector.shape_cast %81 : vector<1x5x10xf32> to vector<5x10xf32>
    %cst_69 = arith.constant dense<0.000000e+00> : vector<5x160xf32>
    %83 = tpu.matmul %82, %77, %cst_69 {dimension_numbers = #tpu.dot_dimension_numbers<[1], [0], [0], [1], [0, 0, 1, 1], [], []>} : vector<5x10xf32>, vector<10x160xf32>, vector<5x160xf32> -> vector<5x160xf32>
    %84 = arith.maximumf %80, %83 : vector<5x160xf32>
    %c0_70 = arith.constant 0 : index
    %c0_71 = arith.constant 0 : index
    %c0_72 = arith.constant 0 : index
    %85 = vector.load %arg15[%c0_70, %c0_71, %c0_72] : memref<2x160x80xf32, #tpu.memory_space<vmem>>, vector<1x160x80xf32>
    %86 = vector.shape_cast %85 : vector<1x160x80xf32> to vector<160x80xf32>
    %cst_73 = arith.constant dense<0.000000e+00> : vector<5x80xf32>
    %87 = tpu.matmul %84, %86, %cst_73 {dimension_numbers = #tpu.dot_dimension_numbers<[1], [0], [0], [1], [0, 0, 1, 1], [], []>} : vector<5x160xf32>, vector<160x80xf32>, vector<5x80xf32> -> vector<5x80xf32>
    %c1_74 = arith.constant 1 : index
    %c0_75 = arith.constant 0 : index
    %c0_76 = arith.constant 0 : index
    %88 = vector.load %arg15[%c1_74, %c0_75, %c0_76] : memref<2x160x80xf32, #tpu.memory_space<vmem>>, vector<1x160x80xf32>
    %89 = vector.shape_cast %88 : vector<1x160x80xf32> to vector<160x80xf32>
    %cst_77 = arith.constant dense<0.000000e+00> : vector<5x80xf32>
    %90 = tpu.matmul %84, %89, %cst_77 {dimension_numbers = #tpu.dot_dimension_numbers<[1], [0], [0], [1], [0, 0, 1, 1], [], []>} : vector<5x160xf32>, vector<160x80xf32>, vector<5x80xf32> -> vector<5x80xf32>
    %91 = arith.maximumf %87, %90 : vector<5x80xf32>
    %cst_78 = arith.constant 0.000000e+00 : f32
    %92 = vector.broadcast %cst_78 : f32 to vector<1x120xf32>
    %93 = vector.extract_strided_slice %91 {offsets = [0, 0], sizes = [1, 80], strides = [1, 1]} : vector<5x80xf32> to vector<1x80xf32>
    %c0_79 = arith.constant 0 : index
    %c0_80 = arith.constant 0 : index
    %c0_81 = arith.constant 0 : index
    %94 = vector.load %arg6[%c0_79, %c0_80, %c0_81] : memref<5x80x120xf32, #tpu.memory_space<vmem>>, vector<1x80x120xf32>
    %95 = vector.shape_cast %94 : vector<1x80x120xf32> to vector<80x120xf32>
    %cst_82 = arith.constant dense<0.000000e+00> : vector<1x120xf32>
    %96 = tpu.matmul %93, %95, %cst_82 {dimension_numbers = #tpu.dot_dimension_numbers<[1], [0], [0], [1], [0, 0, 1, 1], [], []>} : vector<1x80xf32>, vector<80x120xf32>, vector<1x120xf32> -> vector<1x120xf32>
    %97 = arith.addf %92, %96 : vector<1x120xf32>
    %98 = vector.extract_strided_slice %91 {offsets = [1, 0], sizes = [1, 80], strides = [1, 1]} : vector<5x80xf32> to vector<1x80xf32>
    %c1_83 = arith.constant 1 : index
    %c0_84 = arith.constant 0 : index
    %c0_85 = arith.constant 0 : index
    %99 = vector.load %arg6[%c1_83, %c0_84, %c0_85] : memref<5x80x120xf32, #tpu.memory_space<vmem>>, vector<1x80x120xf32>
    %100 = vector.shape_cast %99 : vector<1x80x120xf32> to vector<80x120xf32>
    %cst_86 = arith.constant dense<0.000000e+00> : vector<1x120xf32>
    %101 = tpu.matmul %98, %100, %cst_86 {dimension_numbers = #tpu.dot_dimension_numbers<[1], [0], [0], [1], [0, 0, 1, 1], [], []>} : vector<1x80xf32>, vector<80x120xf32>, vector<1x120xf32> -> vector<1x120xf32>
    %102 = arith.addf %97, %101 : vector<1x120xf32>
    %103 = vector.extract_strided_slice %91 {offsets = [2, 0], sizes = [1, 80], strides = [1, 1]} : vector<5x80xf32> to vector<1x80xf32>
    %c2_87 = arith.constant 2 : index
    %c0_88 = arith.constant 0 : index
    %c0_89 = arith.constant 0 : index
    %104 = vector.load %arg6[%c2_87, %c0_88, %c0_89] : memref<5x80x120xf32, #tpu.memory_space<vmem>>, vector<1x80x120xf32>
    %105 = vector.shape_cast %104 : vector<1x80x120xf32> to vector<80x120xf32>
    %cst_90 = arith.constant dense<0.000000e+00> : vector<1x120xf32>
    %106 = tpu.matmul %103, %105, %cst_90 {dimension_numbers = #tpu.dot_dimension_numbers<[1], [0], [0], [1], [0, 0, 1, 1], [], []>} : vector<1x80xf32>, vector<80x120xf32>, vector<1x120xf32> -> vector<1x120xf32>
    %107 = arith.addf %102, %106 : vector<1x120xf32>
    %108 = vector.extract_strided_slice %91 {offsets = [3, 0], sizes = [1, 80], strides = [1, 1]} : vector<5x80xf32> to vector<1x80xf32>
    %c3_91 = arith.constant 3 : index
    %c0_92 = arith.constant 0 : index
    %c0_93 = arith.constant 0 : index
    %109 = vector.load %arg6[%c3_91, %c0_92, %c0_93] : memref<5x80x120xf32, #tpu.memory_space<vmem>>, vector<1x80x120xf32>
    %110 = vector.shape_cast %109 : vector<1x80x120xf32> to vector<80x120xf32>
    %cst_94 = arith.constant dense<0.000000e+00> : vector<1x120xf32>
    %111 = tpu.matmul %108, %110, %cst_94 {dimension_numbers = #tpu.dot_dimension_numbers<[1], [0], [0], [1], [0, 0, 1, 1], [], []>} : vector<1x80xf32>, vector<80x120xf32>, vector<1x120xf32> -> vector<1x120xf32>
    %112 = arith.addf %107, %111 : vector<1x120xf32>
    %113 = vector.extract_strided_slice %91 {offsets = [4, 0], sizes = [1, 80], strides = [1, 1]} : vector<5x80xf32> to vector<1x80xf32>
    %c4_95 = arith.constant 4 : index
    %c0_96 = arith.constant 0 : index
    %c0_97 = arith.constant 0 : index
    %114 = vector.load %arg6[%c4_95, %c0_96, %c0_97] : memref<5x80x120xf32, #tpu.memory_space<vmem>>, vector<1x80x120xf32>
    %115 = vector.shape_cast %114 : vector<1x80x120xf32> to vector<80x120xf32>
    %cst_98 = arith.constant dense<0.000000e+00> : vector<1x120xf32>
    %116 = tpu.matmul %113, %115, %cst_98 {dimension_numbers = #tpu.dot_dimension_numbers<[1], [0], [0], [1], [0, 0, 1, 1], [], []>} : vector<1x80xf32>, vector<80x120xf32>, vector<1x120xf32> -> vector<1x120xf32>
    %117 = arith.addf %112, %116 : vector<1x120xf32>
    %c0_99 = arith.constant 0 : index
    %c0_100 = arith.constant 0 : index
    %118 = vector.load %arg7[%c0_99, %c0_100] : memref<1x120xf32, #tpu.memory_space<vmem>>, vector<1x120xf32>
    %119 = arith.addf %117, %118 : vector<1x120xf32>
    %cst_101 = arith.constant 0.000000e+00 : f32
    %120 = vector.broadcast %cst_101 : f32 to vector<1x120xf32>
    %121 = arith.maximumf %119, %120 : vector<1x120xf32>
    %c0_102 = arith.constant 0 : index
    %c0_103 = arith.constant 0 : index
    %c0_104 = arith.constant 0 : index
    %122 = vector.load %arg17[%c0_102, %c0_103, %c0_104] : memref<1x1x120xf32, #tpu.memory_space<vmem>>, vector<1x1x120xf32>
    %123 = vector.shape_cast %122 : vector<1x1x120xf32> to vector<1x120xf32>
    %124 = vector.shape_cast %121 : vector<1x120xf32> to vector<1x1x120xf32>
    tpu.vector_store %arg17[%c0_102, %c0_103, %c0_104], %124 {strides = array<i32>} : memref<1x1x120xf32, #tpu.memory_space<vmem>>, vector<1x1x120xf32>,
    %c0_105 = arith.constant 0 : index
    %c0_106 = arith.constant 0 : index
    %125 = vector.load %arg8[%c0_105, %c0_106] : memref<120x84xf32, #tpu.memory_space<vmem>>, vector<120x84xf32>
    %cst_107 = arith.constant dense<0.000000e+00> : vector<1x84xf32>
    %126 = tpu.matmul %121, %125, %cst_107 {dimension_numbers = #tpu.dot_dimension_numbers<[1], [0], [0], [1], [0, 0, 1, 1], [], []>} : vector<1x120xf32>, vector<120x84xf32>, vector<1x84xf32> -> vector<1x84xf32>
    %c0_108 = arith.constant 0 : index
    %c0_109 = arith.constant 0 : index
    %127 = vector.load %arg9[%c0_108, %c0_109] : memref<1x84xf32, #tpu.memory_space<vmem>>, vector<1x84xf32>
    %128 = arith.addf %126, %127 : vector<1x84xf32>
    %cst_110 = arith.constant 0.000000e+00 : f32
    %129 = vector.broadcast %cst_110 : f32 to vector<1x84xf32>
    %130 = arith.maximumf %128, %129 : vector<1x84xf32>
    %c0_111 = arith.constant 0 : index
    %c0_112 = arith.constant 0 : index
    %131 = vector.load %arg10[%c0_111, %c0_112] : memref<84x10xf32, #tpu.memory_space<vmem>>, vector<84x10xf32>
    %cst_113 = arith.constant dense<0.000000e+00> : vector<1x10xf32>
    %132 = tpu.matmul %130, %131, %cst_113 {dimension_numbers = #tpu.dot_dimension_numbers<[1], [0], [0], [1], [0, 0, 1, 1], [], []>} : vector<1x84xf32>, vector<84x10xf32>, vector<1x10xf32> -> vector<1x10xf32>
    %c0_114 = arith.constant 0 : index
    %c0_115 = arith.constant 0 : index
    %133 = vector.load %arg11[%c0_114, %c0_115] : memref<1x10xf32, #tpu.memory_space<vmem>>, vector<1x10xf32>
    %134 = arith.addf %132, %133 : vector<1x10xf32>
    %c0_116 = arith.constant 0 : index
    %c0_117 = arith.constant 0 : index
    %c0_118 = arith.constant 0 : index
    %135 = vector.load %arg16[%c0_116, %c0_117, %c0_118] : memref<1x1x10xf32, #tpu.memory_space<vmem>>, vector<1x1x10xf32>
    %136 = vector.shape_cast %135 : vector<1x1x10xf32> to vector<1x10xf32>
    %137 = vector.shape_cast %134 : vector<1x10xf32> to vector<1x1x10xf32>
    tpu.vector_store %arg16[%c0_116, %c0_117, %c0_118], %137 {strides = array<i32>} : memref<1x1x10xf32, #tpu.memory_space<vmem>>, vector<1x1x10xf32>,
    return
  }
  func.func @transform_0(%arg0: i32) -> (i32, i32, i32, i32) {
    %c0_i32 = arith.constant 0 : i32
    %c0_i32_0 = arith.constant 0 : i32
    %c0_i32_1 = arith.constant 0 : i32
    %c0_i32_2 = arith.constant 0 : i32
    return %arg0, %c0_i32, %c0_i32_0, %c0_i32_1 : i32, i32, i32, i32
  }
  func.func @transform_1(%arg0: i32) -> (i32, i32, i32) {
    %c0_i32 = arith.constant 0 : i32
    %c0_i32_0 = arith.constant 0 : i32
    %c0_i32_1 = arith.constant 0 : i32
    %c0_i32_2 = arith.constant 0 : i32
    return %c0_i32, %c0_i32_0, %c0_i32_1 : i32, i32, i32
  }
  func.func @transform_2(%arg0: i32) -> (i32, i32) {
    %c0_i32 = arith.constant 0 : i32
    %c0_i32_0 = arith.constant 0 : i32
    %c0_i32_1 = arith.constant 0 : i32
    return %c0_i32, %c0_i32_0 : i32, i32
  }
  func.func @transform_3(%arg0: i32) -> (i32, i32, i32) {
    %c0_i32 = arith.constant 0 : i32
    %c0_i32_0 = arith.constant 0 : i32
    %c0_i32_1 = arith.constant 0 : i32
    %c0_i32_2 = arith.constant 0 : i32
    return %c0_i32, %c0_i32_0, %c0_i32_1 : i32, i32, i32
  }
  func.func @transform_4(%arg0: i32) -> (i32, i32) {
    %c0_i32 = arith.constant 0 : i32
    %c0_i32_0 = arith.constant 0 : i32
    %c0_i32_1 = arith.constant 0 : i32
    return %c0_i32, %c0_i32_0 : i32, i32
  }
  func.func @transform_5(%arg0: i32) -> (i32, i32, i32) {
    %c0_i32 = arith.constant 0 : i32
    %c0_i32_0 = arith.constant 0 : i32
    %c0_i32_1 = arith.constant 0 : i32
    %c0_i32_2 = arith.constant 0 : i32
    return %c0_i32, %c0_i32_0, %c0_i32_1 : i32, i32, i32
  }
  func.func @transform_6(%arg0: i32) -> (i32, i32) {
    %c0_i32 = arith.constant 0 : i32
    %c0_i32_0 = arith.constant 0 : i32
    %c0_i32_1 = arith.constant 0 : i32
    return %c0_i32, %c0_i32_0 : i32, i32
  }
  func.func @transform_7(%arg0: i32) -> (i32, i32) {
    %c0_i32 = arith.constant 0 : i32
    %c0_i32_0 = arith.constant 0 : i32
    %c0_i32_1 = arith.constant 0 : i32
    return %c0_i32, %c0_i32_0 : i32, i32
  }
  func.func @transform_8(%arg0: i32) -> (i32, i32) {
    %c0_i32 = arith.constant 0 : i32
    %c0_i32_0 = arith.constant 0 : i32
    %c0_i32_1 = arith.constant 0 : i32
    return %c0_i32, %c0_i32_0 : i32, i32
  }
  func.func @transform_9(%arg0: i32) -> (i32, i32) {
    %c0_i32 = arith.constant 0 : i32
    %c0_i32_0 = arith.constant 0 : i32
    %c0_i32_1 = arith.constant 0 : i32
    return %c0_i32, %c0_i32_0 : i32, i32
  }
  func.func @transform_10(%arg0: i32) -> (i32, i32) {
    %c0_i32 = arith.constant 0 : i32
    %c0_i32_0 = arith.constant 0 : i32
    %c0_i32_1 = arith.constant 0 : i32
    return %c0_i32, %c0_i32_0 : i32, i32
  }
  func.func @transform_11(%arg0: i32) -> (i32, i32, i32) {
    %c0_i32 = arith.constant 0 : i32
    %c0_i32_0 = arith.constant 0 : i32
    %c0_i32_1 = arith.constant 0 : i32
    %c0_i32_2 = arith.constant 0 : i32
    return %c0_i32, %c0_i32_0, %c0_i32_1 : i32, i32, i32
  }
  func.func @transform_12(%arg0: i32) -> (i32, i32, i32) {
    %c0_i32 = arith.constant 0 : i32
    %c0_i32_0 = arith.constant 0 : i32
    %c0_i32_1 = arith.constant 0 : i32
    %c0_i32_2 = arith.constant 0 : i32
    return %c0_i32, %c0_i32_0, %c0_i32_1 : i32, i32, i32
  }
  func.func @transform_13(%arg0: i32) -> (i32, i32, i32) {
    %c0_i32 = arith.constant 0 : i32
    %c0_i32_0 = arith.constant 0 : i32
    %c0_i32_1 = arith.constant 0 : i32
    %c0_i32_2 = arith.constant 0 : i32
    return %c0_i32, %c0_i32_0, %c0_i32_1 : i32, i32, i32
  }
  func.func @transform_14(%arg0: i32) -> (i32, i32, i32) {
    %c0_i32 = arith.constant 0 : i32
    %c0_i32_0 = arith.constant 0 : i32
    %c0_i32_1 = arith.constant 0 : i32
    %c0_i32_2 = arith.constant 0 : i32
    return %c0_i32, %c0_i32_0, %c0_i32_1 : i32, i32, i32
  }
  func.func @transform_15(%arg0: i32) -> (i32, i32, i32) {
    %c0_i32 = arith.constant 0 : i32
    %c0_i32_0 = arith.constant 0 : i32
    %c0_i32_1 = arith.constant 0 : i32
    return %arg0, %c0_i32, %c0_i32_0 : i32, i32, i32
  }
  func.func @transform_16(%arg0: i32) -> (i32, i32, i32) {
    %c0_i32 = arith.constant 0 : i32
    %c0_i32_0 = arith.constant 0 : i32
    %c0_i32_1 = arith.constant 0 : i32
    return %arg0, %c0_i32, %c0_i32_0 : i32, i32, i32
  }
}

</mosaic_0001>

<bundles_post_ra>
// kernel: lenet5_forward.1
= control target key start
LH: loop header
LB: loop body
LE: loop exit
PB: predicated region body
PF: predicated region fallthrough
CT: control target
= control target key end

     0   :  { %s5394_s0 = inlined_call_operand.vmem [shape: f32[2,1,32,32], index: 0, kind: input, shape index: {}]   ;;  %s5395_s1 = inlined_call_operand.vmem [shape: f32[5,32,168], index: 1, kind: input, shape index: {}]   ;;  %s5396_s2 = inlined_call_operand.vmem [shape: f32[1,168], index: 2, kind: input, shape index: {}]   ;;  %s5397_s3 = inlined_call_operand.vmem [shape: f32[5,84,160], index: 3, kind: input, shape index: {}]   ;;  %s5398_s4 = inlined_call_operand.vmem [shape: f32[1,160], index: 4, kind: input, shape index: {}]   ;;  %s5399_s5 = inlined_call_operand.vmem [shape: f32[5,80,120], index: 5, kind: input, shape index: {}]   ;;  %s5400_s6 = inlined_call_operand.vmem [shape: f32[1,120], index: 6, kind: input, shape index: {}]   ;;  %s5401_s7 = inlined_call_operand.vmem [shape: f32[120,84], index: 7, kind: input, shape index: {}]   ;;  %s5402_s8 = inlined_call_operand.vmem [shape: f32[1,84], index: 8, kind: input, shape index: {}]   ;;  %s5403_s9 = inlined_call_operand.vmem [shape: f32[84,10], index: 9, kind: input, shape index: {}]   ;;  %s5404_s10 = inlined_call_operand.vmem [shape: f32[1,10], index: 10, kind: input, shape index: {}]   ;;  %s5405_s11 = inlined_call_operand.vmem [shape: f32[2,14,28], index: 11, kind: input, shape index: {}]   ;;  %s5406_s12 = inlined_call_operand.vmem [shape: f32[2,168,84], index: 12, kind: input, shape index: {}]   ;;  %s5407_s13 = inlined_call_operand.vmem [shape: f32[2,5,10], index: 13, kind: input, shape index: {}]   ;;  %s5408_s14 = inlined_call_operand.vmem [shape: f32[2,160,80], index: 14, kind: input, shape index: {}]   ;;  %s5409_s15 = inlined_call_operand.hbm [shape: f32[2,1,10], index: 15, kind: output, shape index: {0}]   ;;  %s5410_s16 = inlined_call_operand.hbm [shape: f32[2,1,120], index: 16, kind: output, shape index: {1}]  }
   0x1   :  { %5419 = sst [smem:[#allocation14_spill]] %s5394_s0 }
   0x2   :  { %5420 = sst [smem:[#allocation15_spill]] %s5395_s1 }
   0x3   :  { %5421 = sst [smem:[#allocation16_spill]] %s5404_s10 }
   0x4   :  { %5422 = sst [smem:[#allocation17_spill]] %s5409_s15 }
   0x5   :  { %22 = vsyncpa [#allocation3], 0 }
   0x6   :  { %24 = vsyncpa [#allocation3 + $0x1], 0 }
   0x7   :  { %25 = vsyncpa [#allocation5], 0 }
   0x8   :  { %27 = vsyncpa [#allocation5 + $0x1], 0  ;;  %s3973_s21 = smov 0   ;;  %s3975_s22 = smov 0  }
   0x9   :  { %s3977_s23 = smov 0   ;;  %s3979_s24 = smov 0  }
   0xa LB: > { %5423 = sst [smem:[#allocation8_spill]] %s3870_s21  ;;  %s3994_s25 = sadd.s32 4294967295, %s3882_s24   ;;  %s3882_s24 = sphi %s3979_s24, %s5439_s24   ;;  %s3878_s23 = sphi %s3977_s23, %s5441_s23   ;;  %s3874_s22 = sphi %s3975_s22, %s5443_s22   ;;  %s3870_s21 = sphi %s3973_s21, %s5442_s21  }
   0xb   : > { %5424 = sst [smem:[#allocation9_spill]] %s3878_s23  ;;  %s3199_s26 = sadd.s32 4294967294, %s3882_s24  }
   0xc   : > { %5425 = sst [smem:[#allocation10_spill]] %s3882_s24  ;;  %s3998_s27 = sadd.s32 1, %s3882_s24  }
   0xd   : > { %5426 = sst [smem:[#allocation11_spill]] %s3998_s27  ;;  %s360_s28 = sadd.s32 1, %s3878_s23 }
   0xe   : > { %s357_s29 = ssub.s32 %s3882_s24, %s3998_s27  ;;  %p370_p0 = scmp.ne.s32.totalorder %s3878_s23, %s3874_s22 }
   0xf   : > { %p358_p1 = scmp.eq.s32.totalorder %s357_s29, 0  ;;  %p371_p2 = scmp.eq.s32.totalorder %s3994_s25, 1 }
  0x10   : > { %p376_p3 = scmp.ne.s32.totalorder %s3874_s22, %s3870_s21  ;;  %p377_p4 = scmp.eq.s32.totalorder %s3199_s26, 1 }
  0x11   : > { %s4009_s30 = scalar_select %p358_p1, %s3878_s23, %s360_s28  }
  0x12   : > { %p4011_p5 = por %p371_p2, %p370_p0  ;;  %p4015_p6 = por %p377_p4, %p376_p3 }
  0x13   : > { %5427 = sst [smem:[#allocation12_spill]] %s4009_s30  ;;  %p3202_p7 = scmp.ge.s32.totalorder %s3882_s24, 1 }
  0x14   : > { %s5429_s17 = scalar_select %p4015_p6, 1, 0 }
  0x15   : > { %p471_p8 = scmp.lt.s32.totalorder %s3882_s24, 3 }
  0x16   : > { %5430 = sst [smem:[#allocation13_spill]] %s5429_s17 }
  0x17   : > { %p472_p9 = pnand %p3202_p7, %p471_p8 }
  0x18   : > { %s5431_s1 = sld [smem:[#allocation15_spill]] (!%p472_p9)  ;;  %p524_p10 = scmp.lt.s32.totalorder (!%p472_p9), %s3994_s25, 1 }
  0x19   : > { %475 = sbr.rel (%p472_p9) target bundleno = 2006 (0x7d6), region = 80  ;;  %s5432_s19 = sld [smem:[#allocation14_spill]] (!%p472_p9) }
  0x1a   : > { %s5418_s23 = sshll.u32 (!%p472_p9), %s3994_s25, 4  ;;  %s3886_s15 = smov (!%p472_p9), [#allocation4]  }
  0x1b   : > { %s3114_s18 = scalar_lea.hbm (!%p472_p9), %s5410_s16, %s5418_s23  ;;  %s3796_s21 = sshll.u32 (!%p472_p9), %s3886_s15, 4  ;;  %s3797_s21 = int_to_ptr.vmem [resolvable:$false] %s3796_s21 }
  0x1c   : > { %s3798_s24 = scalar_lea.vmem (!%p472_p9), %s3797_s21, 32 }
  0x1e   : > { %v3212_v0 = vld [vmem:[%s5431_s1 + $0x78] sm:$0xff]  ;;  %v3211_v1 = vld [vmem:[%s5431_s1 + $0x70] sm:$0xff]  ;;  %v3210_v2 = vld [vmem:[%s5431_s1 + $0x68] sm:$0xff]  ;;  %v3884_v4 = vmov 0.0   ;;  %s525_s28 = scalar_select %p524_p10, %s3994_s25, 1  ;;  %vm554_vm0 = vcmask 1046528  }
  0x1f   : > { %595 = vmatprep.subr.mxu0 %v3212_v0  ;;  %v3209_v3 = vld [vmem:[%s5431_s1 + $0x60] sm:$0xff]  ;;  %635 = vmatprep.mubr.f32.mxu0 %v3884_v4  ;;  %v3208_v5 = vld [vmem:[%s5431_s1 + $0x58] sm:$0xff]  ;;  %v3207_v6 = vld [vmem:[%s5431_s1 + $0x50] sm:$0xff]  ;;  %vm562_vm1 = vcmask 261120   ;;  %vm888_vm2 = vcmask 1044480   ;;  %vm766_vm3 = vcmask 1045504  }
  0x20   : > { %596 = vmatpush1.msra.mxu0 %v3211_v1  ;;  %v540_v7 = vld [vmem:[%s5431_s1 + $0x38] sm:$0xff]  ;;  %744 = vmatprep.mubr.f32.mxu1 %v3884_v4  ;;  %v539_v8 = vld [vmem:[%s5431_s1 + $0x30] sm:$0xff]  ;;  %v538_v9 = vld [vmem:[%s5431_s1 + $0x28] sm:$0xff]  ;;  %s3481_s29 = sshll.u32 %s525_s28, 5  ;;  %vm1010_vm4 = vcmask 1043456   ;;  %vm1153_vm5 = vcmask 228352  }
  0x21   : > { %597 = vmatprep.subr.mxu0 %v3210_v2  ;;  %3738 = vmatprep.subr.mxu1 %v540_v7  ;;  %v537_v10 = vld [vmem:[%s5431_s1 + $0x20] sm:$0xff]  ;;  %v3206_v11 = vld [vmem:[%s5431_s1 + $0x48] sm:$0xff]  ;;  %v536_v12 = vld [vmem:[%s5431_s1 + $0x18] sm:$0xff]  ;;  %s528_s20 = scalar_lea.vmem %s5432_s19, %s3481_s29  ;;  %vm1354_vm6 = vcmask 326656   ;;  %vm1585_vm7 = vcmask 687104   ;;  %vm2136_vm8 = vcmask 1041408  }
  0x22   : > { %598 = vmatpush1.msra.mxu0 %v3209_v3  ;;  %3742 = vmatpush1.msra.mxu1 %v539_v8  ;;  %v3205_v13 = vld [vmem:[%s5431_s1 + $0x40] sm:$0xff]  ;;  %v535_v14 = vld [vmem:[%s5431_s1 + $0x10] sm:$0xff]  ;;  %v534_v15 = vld [vmem:[%s5431_s1 + $0x8] sm:$0xff]  ;;  %vm2132_vm9 = vcmask 80896   ;;  %vm3885_vm10 = vmmov 0   ;;  %vm2500_vm11 = vcmask 654336  }
  0x23   : > { %599 = vmatprep.subr.mxu0 %v3208_v5  ;;  %3739 = vmatprep.subr.mxu1 %v538_v9  ;;  %v4073_v16 = vld [vmem:[%s528_s20] sm:$0xff]  ;;  %v4075_v17 = vld [vmem:[%s528_s20 + $0x8] sm:$0xff]  ;;  %v4077_v18 = vld [vmem:[%s528_s20 + $0x10] sm:$0xff]  ;;  %s5312_s19 = sand.u32 1, %s3874_s22   ;;  %vm2921_vm12 = vcmask 982016   ;;  %vm2903_vm13 = vcmask 974848  }
  0x24   : > { %600 = vmatpush1.msra.mxu0 %v3207_v6  ;;  %3743 = vmatpush1.msra.mxu1 %v537_v10  ;;  %v555_v19 = vrot.slane %v4073_v16, 1  ;;  %v556_v20 = vrot.slane %v4075_v17, 1  ;;  %v558_v21 = vrot.slane %v4077_v18, 1  ;;  %v533_v22 = vld [vmem:[%s5431_s1] sm:$0xff]  ;;  %v4085_v23 = vld [vmem:[%s528_s20 + $0x18] sm:$0xff]  ;;  %v3239_v28 = vld [vmem:[%s5431_s1 + $0xf0] sm:$0xff] }
  0x25   : > { %601 = vmatprep.subr.mxu0 %v3206_v11  ;;  %3740 = vmatprep.subr.mxu1 %v536_v12  ;;  %v3240_v25 = vld [vmem:[%s5431_s1 + $0xf8] sm:$0xff]  ;;  %v560_v27 = vrot.slane %v4085_v23, 1  ;;  %v3238_v29 = vld [vmem:[%s5431_s1 + $0xe8] sm:$0xff]  ;;  %v3237_v32 = vld [vmem:[%s5431_s1 + $0xe0] sm:$0xff]  ;;  %v889_v34 = vrot.slane %v4073_v16, 3  ;;  %v890_v35 = vrot.slane %v4075_v17, 3 }
  0x26   : > { %602 = vmatpush1.msra.mxu0 %v3205_v13  ;;  %3744 = vmatpush1.msra.mxu1 %v535_v14  ;;  %v557_v24 = vsel %vm554_vm0, %v555_v19, %v556_v20  ;;  %v559_v26 = vsel %vm554_vm0, %v556_v20, %v558_v21  ;;  %v3228_v31 = vld [vmem:[%s5431_s1 + $0xb8] sm:$0xff]  ;;  %v3235_v36 = vld [vmem:[%s5431_s1 + $0xd0] sm:$0xff]  ;;  %v3234_v37 = vld [vmem:[%s5431_s1 + $0xc8] sm:$0xff]  ;;  %v892_v40 = vrot.slane %v4077_v18, 3  ;;  %v894_v45 = vrot.slane %v4085_v23, 3  ;;  %s523_s20 = scalar_lea.vmem [#allocation4], %s5312_s19 }
  0x27   : > { %3741 = vmatprep.subr.mxu1 %v534_v15  ;;  %692 = vmatprep.subr.mxu0 %v540_v7  ;;  %v561_v30 = vsel %vm554_vm0, %v558_v21, %v560_v27  ;;  %v3236_v33 = vld [vmem:[%s5431_s1 + $0xd8] sm:$0xff]  ;;  %v3233_v38 = vld [vmem:[%s5431_s1 + $0xc0] sm:$0xff]  ;;  %v891_v39 = vsel %vm888_vm2, %v889_v34, %v890_v35  ;;  %v3227_v41 = vld [vmem:[%s5431_s1 + $0xb0] sm:$0xff]  ;;  %v767_v47 = vrot.slane %v4073_v16, 2  ;;  %v768_v48 = vrot.slane %v4075_v17, 2  ;;  %s3116_s28 = sshll.u32 %s523_s20, 4  ;;  %s3117_s28 = int_to_ptr.vmem [resolvable:$true] %s3116_s28 }
  0x28   : > { %3213 = vmatmul.mubr.msk.f32.vlgmr.msra.gmra.mxu0 %vm562_vm1, %v557_v24  ;;  %3745 = vmatpush1.msra.mxu1 %v533_v22  ;;  %v3226_v42 = vld [vmem:[%s5431_s1 + $0xa8] sm:$0xff]  ;;  %v3225_v43 = vld [vmem:[%s5431_s1 + $0xa0] sm:$0xff]  ;;  %v893_v44 = vsel %vm888_vm2, %v890_v35, %v892_v40  ;;  %v3224_v46 = vld [vmem:[%s5431_s1 + $0x98] sm:$0xff]  ;;  %v895_v52 = vsel %vm888_vm2, %v892_v40, %v894_v45  ;;  %v770_v54 = vrot.slane %v4077_v18, 2  ;;  %v772_v60 = vrot.slane %v4085_v23, 2  ;;  %s3091_s26 = scalar_lea.sflag [#allocation5], %s5312_s19  ;;  %p3799_p0 = scmp.lt.s32.totalorder %s3117_s28, %s3797_s21 }
  0x29   : > { %641 = vmatprep.mubr.f32.mxu0 %v3884_v4  ;;  %3219 = vmatmul.mubr.msk.f32.vlgmr.msra.gmra.mxu1 %vm562_vm1, %v4077_v18  ;;  %v3223_v49 = vld [vmem:[%s5431_s1 + $0x90] sm:$0xff]  ;;  %v3222_v50 = vld [vmem:[%s5431_s1 + $0x88] sm:$0xff]  ;;  %v3221_v51 = vld [vmem:[%s5431_s1 + $0x80] sm:$0xff]  ;;  %v769_v53 = vsel %vm766_vm3, %v767_v47, %v768_v48  ;;  %v1011_v2 = vrot.slane %v4073_v16, 4  ;;  %v1012_v3 = vrot.slane %v4075_v17, 4  ;;  %v1014_v6 = vrot.slane %v4077_v18, 4 }
  0x2a   : > { %693 = vmatpush1.msra.mxu0 %v539_v8  ;;  %750 = vmatprep.mubr.f32.mxu1 %v3884_v4  ;;  %v3252_v55 = vld [vmem:[%s5431_s1 + $0x138] sm:$0xff]  ;;  %v3251_v56 = vld [vmem:[%s5431_s1 + $0x130] sm:$0xff]  ;;  %v3250_v57 = vld [vmem:[%s5431_s1 + $0x128] sm:$0xff]  ;;  %v771_v59 = vsel %vm766_vm3, %v768_v48, %v770_v54  ;;  %v773_v1 = vsel %vm766_vm3, %v770_v54, %v772_v60  ;;  %v1016_v8 = vrot.slane %v4085_v23, 4  ;;  %s3792_s10 = scalar_lea.vmem %s3117_s28, 16 }
  0x2b   : > { %694 = vmatprep.subr.mxu0 %v538_v9  ;;  %928 = vmatprep.subr.mxu1 %v3240_v25  ;;  %v3249_v58 = vld [vmem:[%s5431_s1 + $0x120] sm:$0xff]  ;;  %v3248_v61 = vld [vmem:[%s5431_s1 + $0x118] sm:$0xff]  ;;  %v3247_v62 = vld [vmem:[%s5431_s1 + $0x110] sm:$0xff]  ;;  %v1013_v5 = vsel %vm1010_vm4, %v1011_v2, %v1012_v3  ;;  %v1015_v7 = vsel %vm1010_vm4, %v1012_v3, %v1014_v6  ;;  %p3793_p11 = scmp.ne.s32.totalorder %s3117_s28, %s3792_s10  ;;  %p3800_p1 = scmp.lt.s32.totalorder %s3798_s24, %s3792_s10 }
  0x2c   : > { %3214 = vmatmul.mubr.msk.f32.gmra.mxu0 %vm562_vm1, %v559_v26  ;;  %929 = vmatpush1.msra.mxu1 %v3239_v28  ;;  %v3246_v63 = vld [vmem:[%s5431_s1 + $0x108] sm:$0xff]  ;;  %v3245_v0 = vld [vmem:[%s5431_s1 + $0x100] sm:$0xff]  ;;  %v1017_v9 = vsel %vm1010_vm4, %v1014_v6, %v1016_v8  ;;  %v1347_v11 = vld [vmem:[%s5406_s12 + $0x70] sm:$0xff] }
  0x2d   : > { %647 = vmatprep.mubr.f32.mxu0 %v3884_v4  ;;  %695 = vmatpush1.msra.mxu0 %v537_v10  ;;  %v1348_v10 = vld [vmem:[%s5406_s12 + $0x78] sm:$0xff]  ;;  %v1345_v13 = vld [vmem:[%s5406_s12 + $0x60] sm:$0xff]  ;;  %v1339_v19 = vld [vmem:[%s5406_s12 + $0x30] sm:$0xff]  ;;  %p3794_p12 = pnand %p3793_p11, %p4011_p5  ;;  %p3801_p2 = por %p3800_p1, %p3799_p0 }
  0x2e   : > { %696 = vmatprep.subr.mxu0 %v536_v12  ;;  %3220 = vmatmul.mubr.msk.f32.gmra.mxu1 %vm562_vm1, %v4085_v23  ;;  %v1346_v12 = vld [vmem:[%s5406_s12 + $0x68] sm:$0xff]  ;;  %v1340_v18 = vld [vmem:[%s5406_s12 + $0x38] sm:$0xff]  ;;  %v1337_v21 = vld [vmem:[%s5406_s12 + $0x20] sm:$0xff] }
  0x2f   : > { %697 = vmatpush1.msra.mxu0 %v535_v14  ;;  %930 = vmatprep.subr.mxu1 %v3238_v29  ;;  %v1344_v14 = vld [vmem:[%s5406_s12 + $0x58] sm:$0xff]  ;;  %v1338_v20 = vld [vmem:[%s5406_s12 + $0x28] sm:$0xff]  ;;  %v1335_v23 = vld [vmem:[%s5406_s12 + $0x10] sm:$0xff]  ;;  %p3795_p13 = pneg %p3794_p12 }
  0x30   : > { %3215 = vmatmul.mubr.msk.f32.gmra.mxu0 %vm562_vm1, %v561_v30  ;;  %698 = vmatprep.subr.mxu0 %v534_v15  ;;  %v1343_v15 = vld [vmem:[%s5406_s12 + $0x50] sm:$0xff] }
  0x31   : > { %653 = vmatprep.mubr.f32.mxu0 %v3884_v4  ;;  %699 = vmatpush1.msra.mxu0 %v533_v22  ;;  %v1336_v22 = vld [vmem:[%s5406_s12 + $0x18] sm:$0xff]  ;;  %p3802_p3 = pnand %p3801_p2, %p3795_p13 }
  0x32   : > { %806 = vmatprep.subr.mxu0 %v3228_v31  ;;  %931 = vmatpush1.msra.mxu1 %v3237_v32 }
  0x33   : > { %932 = vmatprep.subr.mxu1 %v3236_v33  ;;  %968 = vmatprep.mubr.f32.mxu1 %v3884_v4 }
  0x34   : > { %3216 = vmatmul.mubr.msk.f32.gmra.mxu0 %vm562_vm1, %v560_v27  ;;  %933 = vmatpush1.msra.mxu1 %v3235_v36 }
  0x35   : > { %732 = vmatprep.mubr.f32.mxu0 %v3884_v4  ;;  %934 = vmatprep.subr.mxu1 %v3234_v37 }
  0x36   : > { %935 = vmatpush1.msra.mxu1 %v3233_v38 }
  0x37   : > { %3241 = vmatmul.mubr.msk.f32.vlgmr.msra.gmra.mxu1 %vm562_vm1, %v891_v39 }
  0x38   : > { %3217 = vmatmul.mubr.msk.f32.vlgmr.msra.gmra.mxu0 %vm562_vm1, %v4073_v16  ;;  %974 = vmatprep.mubr.f32.mxu1 %v3884_v4  ;;  %v1342_v16 = vld [vmem:[%s5406_s12 + $0x48] sm:$0xff] }
  0x39   : > { %807 = vmatpush1.msra.mxu0 %v3227_v41  ;;  %738 = vmatprep.mubr.f32.mxu0 %v3884_v4 }
  0x3a   : > { %808 = vmatprep.subr.mxu0 %v3226_v42 }
  0x3b   : > { %809 = vmatpush1.msra.mxu0 %v3225_v43  ;;  %3242 = vmatmul.mubr.msk.f32.gmra.mxu1 %vm562_vm1, %v893_v44 }
  0x3c   : > { %3218 = vmatmul.mubr.msk.f32.gmra.mxu0 %vm562_vm1, %v4075_v17  ;;  %810 = vmatprep.subr.mxu0 %v3224_v46  ;;  %v1341_v17 = vld [vmem:[%s5406_s12 + $0x40] sm:$0xff] }
  0x3d   : > { %811 = vmatpush1.msra.mxu0 %v3223_v49  ;;  %846 = vmatprep.mubr.f32.mxu0 %v3884_v4 }
  0x3e   : > { %812 = vmatprep.subr.mxu0 %v3222_v50  ;;  %980 = vmatprep.mubr.f32.mxu1 %v3884_v4 }
  0x3f   : > { %813 = vmatpush1.msra.mxu0 %v3221_v51  ;;  %3243 = vmatmul.mubr.msk.f32.gmra.mxu1 %vm562_vm1, %v895_v52 }
  0x40   : > { %3229 = vmatmul.mubr.msk.f32.vlgmr.msra.gmra.mxu0 %vm562_vm1, %v769_v53  ;;  %1050 = vmatprep.subr.mxu0 %v3252_v55  ;;  %v1125_v55 = vlaneseq }
  0x41   : > { %852 = vmatprep.mubr.f32.mxu0 %v3884_v4  ;;  %1051 = vmatpush1.msra.mxu0 %v3251_v56 }
  0x42   : > { %1052 = vmatprep.subr.mxu0 %v3250_v57  ;;  %986 = vmatprep.mubr.f32.mxu1 %v3884_v4 }
  0x43   : > { %1053 = vmatpush1.msra.mxu0 %v3249_v58  ;;  %3244 = vmatmul.mubr.msk.f32.gmra.mxu1 %vm562_vm1, %v894_v45 }
  0x44   : > { %3230 = vmatmul.mubr.msk.f32.gmra.mxu0 %vm562_vm1, %v771_v59  ;;  %1054 = vmatprep.subr.mxu0 %v3248_v61 }
  0x45   : > { %858 = vmatprep.mubr.f32.mxu0 %v3884_v4  ;;  %1055 = vmatpush1.msra.mxu0 %v3247_v62  ;;  %v4284_v62 = vshrl.u32 %v1125_v55, 7 }
  0x46   : > { %1056 = vmatprep.subr.mxu0 %v3246_v63  ;;  %1230 = vmatprep.mubr.f32.mxu1 %v3884_v4 }
  0x47   : > { %1057 = vmatpush1.msra.mxu0 %v3245_v0 }
  0x48   : > { %3231 = vmatmul.mubr.msk.f32.gmra.mxu0 %vm562_vm1, %v773_v1  ;;  %1361 = vmatprep.subr.mxu0 %v3884_v4 }
  0x49   : > { %864 = vmatprep.mubr.f32.mxu0 %v3884_v4 }
  0x4c   : > { %3232 = vmatmul.mubr.msk.f32.gmra.mxu0 %vm562_vm1, %v772_v60 }
  0x4d   : > { %1090 = vmatprep.mubr.f32.mxu0 %v3884_v4 }
  0x50   : > { %3253 = vmatmul.mubr.msk.f32.vlgmr.msra.gmra.mxu0 %vm562_vm1, %v1013_v5 }
  0x51   : > { %1096 = vmatprep.mubr.f32.mxu0 %v3884_v4  ;;  %1362 = vmatpush1.msra.mxu0 %v1348_v10 }
  0x52   : > { %1363 = vmatprep.subr.mxu0 %v3884_v4 }
  0x53   : > { %1364 = vmatpush1.msra.mxu0 %v1347_v11 }
  0x54   : > { %3254 = vmatmul.mubr.msk.f32.gmra.mxu0 %vm562_vm1, %v1015_v7  ;;  %1365 = vmatprep.subr.mxu0 %v3884_v4 }
  0x55   : > { %1102 = vmatprep.mubr.f32.mxu0 %v3884_v4  ;;  %1366 = vmatpush1.msra.mxu0 %v1346_v12 }
  0x56   : > { %1367 = vmatprep.subr.mxu0 %v3884_v4 }
  0x57   : > { %1368 = vmatpush1.msra.mxu0 %v1345_v13 }
  0x58   : > { %3255 = vmatmul.mubr.msk.f32.gmra.mxu0 %vm562_vm1, %v1017_v9  ;;  %1369 = vmatprep.subr.mxu0 %v3884_v4 }
  0x59   : > { %1108 = vmatprep.mubr.f32.mxu0 %v3884_v4  ;;  %1370 = vmatpush1.msra.mxu0 %v1344_v14  ;;  %v1127_v14 = vsub.s32 0, %v4284_v62 }
  0x5a   : > { %1371 = vmatprep.subr.mxu0 %v3884_v4 }
  0x5b   : > { %1372 = vmatpush1.msra.mxu0 %v1343_v15 }
  0x5c   : > { %3256 = vmatmul.mubr.msk.f32.gmra.mxu0 %vm562_vm1, %v1016_v8  ;;  %1373 = vmatprep.subr.mxu0 %v3884_v4 }
  0x5d   : > { %1374 = vmatpush1.msra.mxu0 %v1342_v16 }
  0x5e   : > { %1375 = vmatprep.subr.mxu0 %v3884_v4 }
  0x5f   : > { %1376 = vmatpush1.msra.mxu0 %v1341_v17 }
  0x60   : > { %1377 = vmatprep.subr.mxu0 %v3884_v4 }
  0x61   : > { %1378 = vmatpush1.msra.mxu0 %v1340_v18 }
  0x62   : > { %1379 = vmatprep.subr.mxu0 %v3884_v4 }
  0x63   : > { %1380 = vmatpush1.msra.mxu0 %v1339_v19  ;;  %v1123_v19 = vld [vmem:[%s5396_s2] sm:$0x3] }
  0x64   : > { %1381 = vmatprep.subr.mxu0 %v3884_v4 }
  0x65   : > { %1382 = vmatpush1.msra.mxu0 %v1338_v20  ;;  %v1131_v20 = vsub.s32 1, %v4284_v62  ;;  %v3403_v62 = vld [vmem:[%s5407_s13 + $0x8] sm:$0x1f] }
  0x66   : > { %1383 = vmatprep.subr.mxu0 %v3884_v4 }
  0x67   : > { %1384 = vmatpush1.msra.mxu0 %v1337_v21 }
  0x68   : > { %1385 = vmatprep.subr.mxu0 %v3884_v4 }
  0x69   : > { %1386 = vmatpush1.msra.mxu0 %v1336_v22 }
  0x6a   : > { %1387 = vmatprep.subr.mxu0 %v3884_v4 }
  0x6b   : > { %1388 = vmatpush1.msra.mxu0 %v1335_v23 }
  0x6c   : > { %1389 = vmatprep.subr.mxu0 %v3884_v4 }
  0xe8   : > { %v637_v24 = vpop.f32.mrf.mxu0 }
  0xe9   : > { %v746_v29 = vpop.f32.mrf.mxu1 }
  0xea   : > { %v639_v25 = vpop.f32.mrf.mxu0 }
  0xeb   : > { %v748_v31 = vpop.f32.mrf.mxu1 }
  0xec   : > { %v643_v26 = vpop.f32.mrf.mxu0 }
  0xee   : > { %v645_v27 = vpop.f32.mrf.mxu0  ;;  %v752_v34 = vpop.f32.mrf.mxu1 }
  0xf0   : > { %v649_v28 = vpop.f32.mrf.mxu0  ;;  %v754_v37 = vpop.f32.mrf.mxu1 }
  0xf1   : > { %v747_v60 = vadd.f32 %v746_v29, %v649_v28  ;;  %v1128_v29 = vrot.slane %v1123_v19, %v1127_v14 }
  0xf2   : > { %v651_v30 = vpop.f32.mrf.mxu0 }
  0xf3   : > { %v749_v58 = vadd.f32 %v748_v31, %v651_v30 }
  0xf4   : > { %v655_v32 = vpop.f32.mrf.mxu0 }
  0xf5   : > { %v753_v59 = vadd.f32 %v752_v34, %v655_v32 }
  0xf6   : > { %v657_v33 = vpop.f32.mrf.mxu0 }
  0xf7   : > { %v970_v40 = vpop.f32.mrf.mxu1  ;;  %v755_v0 = vadd.f32 %v754_v37, %v657_v33  ;;  %v1132_v33 = vrot.slane %v1123_v19, %v1131_v20  ;;  %v1352_v19 = vld [vmem:[%s5406_s12 + $0x98] sm:$0xff] }
  0xf8   : > { %v734_v35 = vpop.f32.mrf.mxu0 }
  0xf9   : > { %v972_v43 = vpop.f32.mrf.mxu1  ;;  %v735_v11 = vadd.f32 %v734_v35, %v637_v24 }
  0xfa   : > { %v736_v36 = vpop.f32.mrf.mxu0 }
  0xfb   : > { %v976_v46 = vpop.f32.mrf.mxu1  ;;  %v737_v8 = vadd.f32 %v736_v36, %v639_v25 }
  0xfc   : > { %v740_v38 = vpop.f32.mrf.mxu0 }
  0xfd   : > { %v978_v48 = vpop.f32.mrf.mxu1  ;;  %v741_v5 = vadd.f32 %v740_v38, %v643_v26 }
  0xfe   : > { %v742_v39 = vpop.f32.mrf.mxu0 }
  0xff   : > { %v982_v51 = vpop.f32.mrf.mxu1  ;;  %v743_v1 = vadd.f32 %v742_v39, %v645_v27 }
 0x100   : > { %v848_v41 = vpop.f32.mrf.mxu0 }
 0x101   : > { %v984_v54 = vpop.f32.mrf.mxu1  ;;  %v871_v21 = vadd.f32 %v848_v41, %v735_v11  ;;  %v3271_v11 = vld [vmem:[%s5406_s12 + $0xb8] sm:$0xff] }
 0x102   : > { %v850_v42 = vpop.f32.mrf.mxu0 }
 0x103   : > { %v988_v61 = vpop.f32.mrf.mxu1  ;;  %v872_v16 = vadd.f32 %v850_v42, %v737_v8  ;;  %v993_v36 = vadd.f32 %v970_v40, %v871_v21  ;;  %v3274_v8 = vld [vmem:[%s5406_s12 + $0xd0] sm:$0xff]  ;;  %v3288_v21 = vld [vmem:[%s5406_s12 + $0x140] sm:$0xff] }
 0x104   : > { %v854_v44 = vpop.f32.mrf.mxu0 }
 0x105   : > { %v873_v12 = vadd.f32 %v854_v44, %v741_v5  ;;  %v990_v13 = vpop.f32.mrf.mxu1  ;;  %v994_v32 = vadd.f32 %v972_v43, %v872_v16  ;;  %v3277_v5 = vld [vmem:[%s5406_s12 + $0xe8] sm:$0xff] }
 0x106   : > { %v856_v45 = vpop.f32.mrf.mxu0  ;;  %v3269_v16 = vld [vmem:[%s5406_s12 + $0xa8] sm:$0xff] }
 0x107   : > { %v874_v9 = vadd.f32 %v856_v45, %v743_v1  ;;  %v995_v28 = vadd.f32 %v976_v46, %v873_v12  ;;  %v3280_v1 = vld [vmem:[%s5406_s12 + $0x100] sm:$0xff]  ;;  %v1334_v12 = vld [vmem:[%s5406_s12 + $0x8] sm:$0xff] }
 0x108   : > { %v860_v47 = vpop.f32.mrf.mxu0  ;;  %1390 = vmatpush1.msra.mxu0 %v1334_v12  ;;  %v1536_v12 = vld [vmem:[%s5397_s3 + $0x8] sm:$0xff] }
 0x109   : > { %v875_v6 = vadd.f32 %v860_v47, %v747_v60  ;;  %v996_v25 = vadd.f32 %v978_v48, %v874_v9  ;;  %v3283_v60 = vld [vmem:[%s5406_s12 + $0x118] sm:$0xff]  ;;  %v3273_v9 = vld [vmem:[%s5406_s12 + $0xc8] sm:$0xff]  ;;  %1391 = vmatprep.subr.mxu0 %v3884_v4 }
 0x10a   : > { %v862_v49 = vpop.f32.mrf.mxu0 }
 0x10b   : > { %v876_v2 = vadd.f32 %v862_v49, %v749_v58  ;;  %v997_v22 = vadd.f32 %v982_v51, %v875_v6  ;;  %v3261_v58 = vld [vmem:[%s5405_s11 + $0x10] sm:$0xff]  ;;  %v3276_v6 = vld [vmem:[%s5406_s12 + $0xe0] sm:$0xff] }
 0x10c   : > { %v866_v50 = vpop.f32.mrf.mxu0 }
 0x10d   : > { %v877_v3 = vadd.f32 %v866_v50, %v753_v59  ;;  %v998_v17 = vadd.f32 %v984_v54, %v876_v2  ;;  %v3284_v59 = vld [vmem:[%s5406_s12 + $0x120] sm:$0xff]  ;;  %v3279_v2 = vld [vmem:[%s5406_s12 + $0xf8] sm:$0xff] }
 0x10e   : > { %v868_v52 = vpop.f32.mrf.mxu0 }
 0x10f   : > { %v878_v10 = vadd.f32 %v868_v52, %v755_v0  ;;  %v999_v18 = vadd.f32 %v988_v61, %v877_v3  ;;  %v3262_v61 = vld [vmem:[%s5405_s11 + $0x18] sm:$0x3f]  ;;  %v3281_v0 = vld [vmem:[%s5406_s12 + $0x108] sm:$0xff]  ;;  %v3278_v3 = vld [vmem:[%s5406_s12 + $0xf0] sm:$0xff] }
 0x110   : > { %v1092_v53 = vpop.f32.mrf.mxu0 }
 0x111   : > { %v1000_v26 = vadd.f32 %v990_v13, %v878_v10  ;;  %v1115_v44 = vadd.f32 %v1092_v53, %v993_v36  ;;  %v3272_v10 = vld [vmem:[%s5406_s12 + $0xc0] sm:$0xff]  ;;  %v3270_v13 = vld [vmem:[%s5406_s12 + $0xb0] sm:$0xff] }
 0x112   : > { %v1094_v56 = vpop.f32.mrf.mxu0 }
 0x113   : > { %v1116_v39 = vadd.f32 %v1094_v56, %v994_v32  ;;  %v1135_v43 = vadd.f32 %v1128_v29, %v1115_v44  ;;  %v1151_v56 = vld [vmem:[%s5405_s11] sm:$0xff]  ;;  %v3311_v44 = vld [vmem:[%s5397_s3 + $0x148] sm:$0xff] }
 0x114   : > { %v1098_v57 = vpop.f32.mrf.mxu0 }
 0x115   : > { %v1117_v37 = vadd.f32 %v1098_v57, %v995_v28  ;;  %v1136_v50 = vadd.f32 %v1132_v33, %v1116_v39  ;;  %v1143_v53 = vmax.f32 %v1135_v43, 0.0  ;;  %v1152_v57 = vld [vmem:[%s5405_s11 + $0x8] sm:$0x3f]  ;;  %v1555_v39 = vld [vmem:[%s5397_s3 + $0xa0] sm:$0xf] }
 0x116   : > { %v1100_v63 = vpop.f32.mrf.mxu0  ;;  %v1556_v28 = vld [vmem:[%s5397_s3 + $0xa8] sm:$0xf]  ;;  %v1551_v43 = vld [vmem:[%s5397_s3 + $0x80] sm:$0xff] }
 0x117   : > { %v1118_v34 = vadd.f32 %v1100_v63, %v996_v25  ;;  %v1137_v48 = vadd.f32 %v1128_v29, %v1117_v37  ;;  %v1144_v55 = vmax.f32 %v1136_v50, 0.0  ;;  %v3282_v63 = vld [vmem:[%s5406_s12 + $0x110] sm:$0xff]  ;;  %v1350_v25 = vld [vmem:[%s5406_s12 + $0x88] sm:$0xff] }
 0x118   : > { %v1104_v7 = vpop.f32.mrf.mxu0  ;;  %v1552_v50 = vld [vmem:[%s5397_s3 + $0x88] sm:$0xff] }
 0x119   : > { %v1119_v30 = vadd.f32 %v1104_v7, %v997_v22  ;;  %v1138_v46 = vadd.f32 %v1132_v33, %v1118_v34  ;;  %v1145_v54 = vmax.f32 %v1137_v48, 0.0  ;;  %v3275_v7 = vld [vmem:[%s5406_s12 + $0xd8] sm:$0xff]  ;;  %v1351_v22 = vld [vmem:[%s5406_s12 + $0x90] sm:$0xff] }
 0x11a   : > { %v1106_v15 = vpop.f32.mrf.mxu0  ;;  %v1553_v48 = vld [vmem:[%s5397_s3 + $0x90] sm:$0xff] }
 0x11b   : > { %v1120_v24 = vadd.f32 %v1106_v15, %v998_v17  ;;  %v1139_v45 = vadd.f32 %v1128_v29, %v1119_v30  ;;  %v1146_v40 = vmax.f32 %v1138_v46, 0.0  ;;  %v1333_v15 = vld [vmem:[%s5406_s12] sm:$0xff] }
 0x11c   : > { %v1110_v23 = vpop.f32.mrf.mxu0  ;;  %1392 = vmatpush1.msra.mxu0 %v1333_v15  ;;  %v1353_v17 = vld [vmem:[%s5406_s12 + $0xa0] sm:$0xff] }
 0x11d   : > { %v1121_v27 = vadd.f32 %v1110_v23, %v999_v18  ;;  %v1140_v41 = vadd.f32 %v1132_v33, %v1120_v24  ;;  %v1147_v52 = vmax.f32 %v1139_v45, 0.0  ;;  %1415 = vmatprep.subr.mxu0 %v3884_v4  ;;  %v3289_v18 = vld [vmem:[%s5406_s12 + $0x148] sm:$0xff]  ;;  %v3287_v23 = vld [vmem:[%s5406_s12 + $0x138] sm:$0xff]  ;;  %v1349_v24 = vld [vmem:[%s5406_s12 + $0x80] sm:$0xff] }
 0x11e   : > { %v1112_v31 = vpop.f32.mrf.mxu0  ;;  %1416 = vmatpush2.msra.mxu0 %v1353_v17  ;;  %v1535_v15 = vld [vmem:[%s5397_s3] sm:$0xff]  ;;  %v3369_v17 = vld [vmem:[%s5397_s3 + $0x2b8] sm:$0xf] }
 0x11f   : > { %v1122_v35 = vadd.f32 %v1112_v31, %v1000_v26  ;;  %v1141_v38 = vadd.f32 %v1128_v29, %v1121_v27  ;;  %v1148_v51 = vmax.f32 %v1140_v41, 0.0  ;;  %1417 = vmatprep.subr.mxu0 %v3884_v4  ;;  %v3286_v26 = vld [vmem:[%s5406_s12 + $0x130] sm:$0xff]  ;;  %v3285_v27 = vld [vmem:[%s5406_s12 + $0x128] sm:$0xff]  ;;  %v3313_v29 = vld [vmem:[%s5397_s3 + $0x158] sm:$0xf] }
 0x120   : > { %1418 = vmatpush2.msra.mxu0 %v1352_v19  ;;  %v3312_v41 = vld [vmem:[%s5397_s3 + $0x150] sm:$0xf] }
 0x121   : > { %v1142_v42 = vadd.f32 %v1132_v33, %v1122_v35  ;;  %v1149_v49 = vmax.f32 %v1141_v38, 0.0  ;;  %1419 = vmatprep.subr.mxu0 %v3884_v4  ;;  %v3296_v19 = vld [vmem:[%s5397_s3 + $0xd0] sm:$0xff] }
 0x122   : > { %1420 = vmatpush2.msra.mxu0 %v1351_v22  ;;  %v3294_v22 = vld [vmem:[%s5397_s3 + $0xc0] sm:$0xff] }
 0x123   : > { %v1150_v47 = vmax.f32 %v1142_v42, 0.0  ;;  %1421 = vmatprep.subr.mxu0 %v3884_v4  ;;  %v1554_v42 = vld [vmem:[%s5397_s3 + $0x98] sm:$0xff] }
 0x124   : > { %1422 = vmatpush2.msra.mxu0 %v1350_v25  ;;  %v3292_v25 = vld [vmem:[%s5397_s3 + $0xb0] sm:$0xff] }
 0x125   : > { %3257 = vmatprep.subr.msk.mxu1 %vm1010_vm4, %v1150_v47  ;;  %1423 = vmatprep.subr.mxu0 %v3884_v4 }
 0x126   : > { %3258 = vmatpush1.msk.msra.mxu1 %vm1010_vm4, %v1149_v49  ;;  %1424 = vmatpush2.msra.mxu0 %v1349_v24 }
 0x127   : > { %1192 = vmatprep.subr.mxu1 %v1148_v51  ;;  %3314 = vmatprep.subr.msk.mxu0 %vm1010_vm4, %v3313_v29  ;;  %v3368_v29 = vld [vmem:[%s5397_s3 + $0x2b0] sm:$0xf] }
 0x128   : > { %1193 = vmatpush1.msra.mxu1 %v1147_v52 }
 0x129   : > { %1194 = vmatprep.subr.mxu1 %v1146_v40 }
 0x12a   : > { %1195 = vmatpush1.msra.mxu1 %v1145_v54 }
 0x12b   : > { %1196 = vmatprep.subr.mxu1 %v1144_v55 }
 0x12c   : > { %1197 = vmatpush1.msra.mxu1 %v1143_v53 }
 0x12d   : > { %3259 = vmatmul.mubr.msk.f32.vlgmr.msra.gmra.mxu1 %vm1153_vm5, %v1151_v56  ;;  %3263 = vmatprep.subr.msk.mxu1 %vm1010_vm4, %v1150_v47  ;;  %v1548_v56 = vld [vmem:[%s5397_s3 + $0x68] sm:$0xff] }
 0x12e   : > { %3264 = vmatpush1.msk.msra.mxu1 %vm1010_vm4, %v1149_v49  ;;  %1236 = vmatprep.mubr.f32.mxu1 %v3884_v4  ;;  %v3310_v49 = vld [vmem:[%s5397_s3 + $0x140] sm:$0xff] }
 0x12f   : > { %1278 = vmatprep.subr.mxu1 %v1148_v51  ;;  %v3309_v51 = vld [vmem:[%s5397_s3 + $0x138] sm:$0xff] }
 0x130   : > { %1279 = vmatpush1.msra.mxu1 %v1147_v52  ;;  %v3308_v52 = vld [vmem:[%s5397_s3 + $0x130] sm:$0xff] }
 0x131   : > { %3260 = vmatmul.mubr.msk.f32.gmra.mxu1 %vm1153_vm5, %v1152_v57  ;;  %1280 = vmatprep.subr.mxu1 %v1146_v40  ;;  %v1550_v40 = vld [vmem:[%s5397_s3 + $0x78] sm:$0xff] }
 0x132   : > { %1281 = vmatpush1.msra.mxu1 %v1145_v54  ;;  %1316 = vmatprep.mubr.f32.mxu1 %v3884_v4  ;;  %v3307_v54 = vld [vmem:[%s5397_s3 + $0x128] sm:$0xff]  ;;  %v3305_v57 = vld [vmem:[%s5397_s3 + $0x118] sm:$0xff] }
 0x133   : > { %1282 = vmatprep.subr.mxu1 %v1144_v55  ;;  %v1549_v55 = vld [vmem:[%s5397_s3 + $0x70] sm:$0xff] }
 0x134   : > { %1283 = vmatpush1.msra.mxu1 %v1143_v53  ;;  %v3306_v53 = vld [vmem:[%s5397_s3 + $0x120] sm:$0xff] }
 0x135   : > { %3265 = vmatmul.mubr.msk.f32.vlgmr.msra.gmra.mxu1 %vm1153_vm5, %v3261_v58  ;;  %1458 = vmatprep.subr.mxu1 %v3884_v4  ;;  %v1547_v58 = vld [vmem:[%s5397_s3 + $0x60] sm:$0xff] }
 0x136   : > { %1322 = vmatprep.mubr.f32.mxu1 %v3884_v4  ;;  %1459 = vmatpush1.msra.mxu1 %v3284_v59  ;;  %v3304_v59 = vld [vmem:[%s5397_s3 + $0x110] sm:$0xff] }
 0x137   : > { %1460 = vmatprep.subr.mxu1 %v3884_v4 }
 0x138   : > { %1461 = vmatpush1.msra.mxu1 %v3283_v60  ;;  %v1546_v60 = vld [vmem:[%s5397_s3 + $0x58] sm:$0xff] }
 0x139   : > { %3266 = vmatmul.mubr.msk.f32.gmra.mxu1 %vm1153_vm5, %v3262_v61  ;;  %1462 = vmatprep.subr.mxu1 %v3884_v4  ;;  %v3303_v61 = vld [vmem:[%s5397_s3 + $0x108] sm:$0xff] }
 0x13a   : > { %1463 = vmatpush1.msra.mxu1 %v3282_v63  ;;  %v1545_v63 = vld [vmem:[%s5397_s3 + $0x50] sm:$0xff] }
 0x13b   : > { %1464 = vmatprep.subr.mxu1 %v3884_v4 }
 0x13c   : > { %1465 = vmatpush1.msra.mxu1 %v3281_v0  ;;  %v3302_v0 = vld [vmem:[%s5397_s3 + $0x100] sm:$0xff] }
 0x13d   : > { %1466 = vmatprep.subr.mxu1 %v3884_v4 }
 0x13e   : > { %1467 = vmatpush1.msra.mxu1 %v3280_v1  ;;  %v1544_v1 = vld [vmem:[%s5397_s3 + $0x48] sm:$0xff] }
 0x13f   : > { %1468 = vmatprep.subr.mxu1 %v3884_v4 }
 0x140   : > { %1469 = vmatpush1.msra.mxu1 %v3279_v2  ;;  %v3301_v2 = vld [vmem:[%s5397_s3 + $0xf8] sm:$0xff] }
 0x141   : > { %1470 = vmatprep.subr.mxu1 %v3884_v4 }
 0x142   : > { %1471 = vmatpush1.msra.mxu1 %v3278_v3  ;;  %v1543_v3 = vld [vmem:[%s5397_s3 + $0x40] sm:$0xff] }
 0x143   : > { %1472 = vmatprep.subr.mxu1 %v3884_v4 }
 0x144   : > { %1473 = vmatpush1.msra.mxu1 %v3277_v5  ;;  %v1542_v5 = vld [vmem:[%s5397_s3 + $0x38] sm:$0xff] }
 0x145   : > { %1474 = vmatprep.subr.mxu1 %v3884_v4 }
 0x146   : > { %1475 = vmatpush1.msra.mxu1 %v3276_v6  ;;  %v1541_v6 = vld [vmem:[%s5397_s3 + $0x30] sm:$0xff] }
 0x147   : > { %1476 = vmatprep.subr.mxu1 %v3884_v4 }
 0x148   : > { %1477 = vmatpush1.msra.mxu1 %v3275_v7  ;;  %v1540_v7 = vld [vmem:[%s5397_s3 + $0x28] sm:$0xff] }
 0x149   : > { %1478 = vmatprep.subr.mxu1 %v3884_v4 }
 0x14a   : > { %1479 = vmatpush1.msra.mxu1 %v3274_v8  ;;  %v1539_v8 = vld [vmem:[%s5397_s3 + $0x20] sm:$0xff] }
 0x14b   : > { %1480 = vmatprep.subr.mxu1 %v3884_v4 }
 0x14c   : > { %1481 = vmatpush1.msra.mxu1 %v3273_v9  ;;  %v1538_v9 = vld [vmem:[%s5397_s3 + $0x18] sm:$0xff] }
 0x14d   : > { %1482 = vmatprep.subr.mxu1 %v3884_v4 }
 0x14e   : > { %1483 = vmatpush1.msra.mxu1 %v3272_v10  ;;  %v1537_v10 = vld [vmem:[%s5397_s3 + $0x10] sm:$0xff] }
 0x14f   : > { %1484 = vmatprep.subr.mxu1 %v3884_v4 }
 0x150   : > { %1485 = vmatpush1.msra.mxu1 %v3271_v11  ;;  %v3300_v11 = vld [vmem:[%s5397_s3 + $0xf0] sm:$0xff] }
 0x151   : > { %1486 = vmatprep.subr.mxu1 %v3884_v4 }
 0x152   : > { %1487 = vmatpush1.msra.mxu1 %v3270_v13  ;;  %v3299_v13 = vld [vmem:[%s5397_s3 + $0xe8] sm:$0xff] }
 0x153   : > { %1488 = vmatprep.subr.mxu1 %v3884_v4 }
 0x154   : > { %1489 = vmatpush1.msra.mxu1 %v3269_v16  ;;  %v3298_v16 = vld [vmem:[%s5397_s3 + $0xe0] sm:$0xff] }
 0x155   : > { %1512 = vmatprep.subr.mxu1 %v3884_v4 }
 0x156   : > { %1513 = vmatpush2.msra.mxu1 %v3289_v18  ;;  %v3297_v18 = vld [vmem:[%s5397_s3 + $0xd8] sm:$0xff] }
 0x157   : > { %1514 = vmatprep.subr.mxu1 %v3884_v4 }
 0x158   : > { %1515 = vmatpush2.msra.mxu1 %v3288_v21  ;;  %v3295_v21 = vld [vmem:[%s5397_s3 + $0xc8] sm:$0xff] }
 0x159   : > { %1516 = vmatprep.subr.mxu1 %v3884_v4 }
 0x15a   : > { %1517 = vmatpush2.msra.mxu1 %v3287_v23  ;;  %v3293_v23 = vld [vmem:[%s5397_s3 + $0xb8] sm:$0xff] }
 0x15b   : > { %1518 = vmatprep.subr.mxu1 %v3884_v4 }
 0x15c   : > { %1519 = vmatpush2.msra.mxu1 %v3286_v26  ;;  %v3343_v26 = vld [vmem:[%s5397_s3 + $0x208] sm:$0xf] }
 0x15d   : > { %1520 = vmatprep.subr.mxu1 %v3884_v4 }
 0x15e   : > { %1521 = vmatpush2.msra.mxu1 %v3285_v27 }
 0x15f   : > { %3318 = vmatprep.subr.msk.mxu1 %vm1010_vm4, %v1556_v28 }
 0x1ed   : > { %v1232_v30 = vpop.f32.mrf.mxu1 }
 0x1ef   : > { %v1234_v31 = vpop.f32.mrf.mxu1 }
 0x1f1   : > { %v1238_v32 = vpop.f32.mrf.mxu1 }
 0x1f3   : > { %v1240_v33 = vpop.f32.mrf.mxu1 }
 0x1f5   : > { %v1318_v34 = vpop.f32.mrf.mxu1 }
 0x1f6   : > { %v1329_v37 = vmax.f32 %v1232_v30, %v1318_v34 }
 0x1f7   : > { %v1320_v35 = vpop.f32.mrf.mxu1 }
 0x1f8   : > { %v1330_v36 = vmax.f32 %v1234_v31, %v1320_v35 }
 0x1f9   : > { %v1324_v38 = vpop.f32.mrf.mxu1 }
 0x1fa   : > { %3267 = vmatprep.mubr.msk.f32.mxu0 %vm1354_vm6, %v1330_v36  ;;  %3290 = vmatprep.mubr.msk.f32.mxu1 %vm1354_vm6, %v1330_v36  ;;  %v1331_v47 = vmax.f32 %v1238_v32, %v1324_v38  ;;  %v3367_v32 = vld [vmem:[%s5397_s3 + $0x2a8] sm:$0xff]  ;;  %v3365_v36 = vld [vmem:[%s5397_s3 + $0x298] sm:$0xff]  ;;  %v3364_v38 = vld [vmem:[%s5397_s3 + $0x290] sm:$0xff] }
 0x1fb   : > { %v1326_v45 = vpop.f32.mrf.mxu1  ;;  %1426 = vmatmul.mubr.f32.vlgmr.msra.gmra.mxu0 %v1329_v37  ;;  %1523 = vmatmul.mubr.f32.vlgmr.msra.gmra.mxu1 %v1329_v37 }
 0x1fc   : > { %v1332_v46 = vmax.f32 %v1240_v33, %v1326_v45  ;;  %3319 = vmatpush1.msk.msra.mxu1 %vm1010_vm4, %v1555_v39  ;;  %3315 = vmatpush1.msk.msra.mxu0 %vm1010_vm4, %v3312_v41  ;;  %v3366_v33 = vld [vmem:[%s5397_s3 + $0x2a0] sm:$0xff] }
 0x1fd   : > { %1695 = vmatprep.subr.mxu1 %v1554_v42  ;;  %1608 = vmatprep.subr.mxu0 %v3311_v44  ;;  %v3363_v42 = vld [vmem:[%s5397_s3 + $0x288] sm:$0xff]  ;;  %v3362_v44 = vld [vmem:[%s5397_s3 + $0x280] sm:$0xff] }
 0x1fe   : > { %3268 = vmatprep.mubr.msk.f32.mxu0 %vm1354_vm6, %v1332_v46  ;;  %3291 = vmatprep.mubr.msk.f32.mxu1 %vm1354_vm6, %v1332_v46 }
 0x1ff   : > { %1431 = vmatmul.mubr.f32.gmra.mxu0 %v1331_v47  ;;  %1528 = vmatmul.mubr.f32.gmra.mxu1 %v1331_v47  ;;  %v3342_v47 = vld [vmem:[%s5397_s3 + $0x200] sm:$0xf] }
 0x200   : > { %1696 = vmatpush1.msra.mxu1 %v1553_v48  ;;  %1609 = vmatpush1.msra.mxu0 %v3310_v49  ;;  %v3361_v48 = vld [vmem:[%s5397_s3 + $0x278] sm:$0xff] }
 0x201   : > { %1697 = vmatprep.subr.mxu1 %v1552_v50  ;;  %1610 = vmatprep.subr.mxu0 %v3309_v51  ;;  %v3341_v50 = vld [vmem:[%s5397_s3 + $0x1f8] sm:$0xff]  ;;  %v3360_v51 = vld [vmem:[%s5397_s3 + $0x270] sm:$0xff] }
 0x202   : > { %1698 = vmatpush1.msra.mxu1 %v1551_v43  ;;  %1611 = vmatpush1.msra.mxu0 %v3308_v52  ;;  %v3340_v43 = vld [vmem:[%s5397_s3 + $0x1f0] sm:$0xff]  ;;  %v3359_v52 = vld [vmem:[%s5397_s3 + $0x268] sm:$0xff] }
 0x203   : > { %1699 = vmatprep.subr.mxu1 %v1550_v40  ;;  %1612 = vmatprep.subr.mxu0 %v3307_v54  ;;  %v3339_v40 = vld [vmem:[%s5397_s3 + $0x1e8] sm:$0xff]  ;;  %v3358_v54 = vld [vmem:[%s5397_s3 + $0x260] sm:$0xff] }
 0x204   : > { %1700 = vmatpush1.msra.mxu1 %v1549_v55  ;;  %1613 = vmatpush1.msra.mxu0 %v3306_v53  ;;  %v3338_v55 = vld [vmem:[%s5397_s3 + $0x1e0] sm:$0xff]  ;;  %v3357_v53 = vld [vmem:[%s5397_s3 + $0x258] sm:$0xff] }
 0x205   : > { %1701 = vmatprep.subr.mxu1 %v1548_v56  ;;  %1614 = vmatprep.subr.mxu0 %v3305_v57  ;;  %v3337_v56 = vld [vmem:[%s5397_s3 + $0x1d8] sm:$0xff]  ;;  %v3356_v57 = vld [vmem:[%s5397_s3 + $0x250] sm:$0xff] }
 0x206   : > { %1702 = vmatpush1.msra.mxu1 %v1547_v58  ;;  %1615 = vmatpush1.msra.mxu0 %v3304_v59  ;;  %v3336_v58 = vld [vmem:[%s5397_s3 + $0x1d0] sm:$0xff]  ;;  %v3355_v59 = vld [vmem:[%s5397_s3 + $0x248] sm:$0xff] }
 0x207   : > { %1703 = vmatprep.subr.mxu1 %v1546_v60  ;;  %1616 = vmatprep.subr.mxu0 %v3303_v61  ;;  %v3335_v60 = vld [vmem:[%s5397_s3 + $0x1c8] sm:$0xff]  ;;  %v3354_v61 = vld [vmem:[%s5397_s3 + $0x240] sm:$0xff] }
 0x208   : > { %1704 = vmatpush1.msra.mxu1 %v1545_v63  ;;  %1617 = vmatpush1.msra.mxu0 %v3302_v0  ;;  %v3334_v63 = vld [vmem:[%s5397_s3 + $0x1c0] sm:$0xff]  ;;  %v3353_v0 = vld [vmem:[%s5397_s3 + $0x238] sm:$0xff] }
 0x209   : > { %1705 = vmatprep.subr.mxu1 %v1544_v1  ;;  %1618 = vmatprep.subr.mxu0 %v3301_v2  ;;  %v3333_v1 = vld [vmem:[%s5397_s3 + $0x1b8] sm:$0xff]  ;;  %v3352_v2 = vld [vmem:[%s5397_s3 + $0x230] sm:$0xff] }
 0x20a   : > { %1706 = vmatpush1.msra.mxu1 %v1543_v3  ;;  %1747 = vmatprep.mubr.f32.mxu1 %v3884_v4  ;;  %v3332_v3 = vld [vmem:[%s5397_s3 + $0x1b0] sm:$0xff] }
 0x20b   : > { %1707 = vmatprep.subr.mxu1 %v1542_v5  ;;  %1660 = vmatprep.mubr.f32.mxu0 %v3884_v4  ;;  %v3351_v5 = vld [vmem:[%s5397_s3 + $0x228] sm:$0xff] }
 0x20c   : > { %1708 = vmatpush1.msra.mxu1 %v1541_v6  ;;  %1619 = vmatpush1.msra.mxu0 %v3300_v11  ;;  %v3331_v6 = vld [vmem:[%s5397_s3 + $0x1a8] sm:$0xff]  ;;  %v3329_v11 = vld [vmem:[%s5397_s3 + $0x198] sm:$0xff] }
 0x20d   : > { %1709 = vmatprep.subr.mxu1 %v1540_v7  ;;  %1620 = vmatprep.subr.mxu0 %v3299_v13  ;;  %v3350_v7 = vld [vmem:[%s5397_s3 + $0x220] sm:$0xff]  ;;  %v3328_v13 = vld [vmem:[%s5397_s3 + $0x190] sm:$0xff] }
 0x20e   : > { %1710 = vmatpush1.msra.mxu1 %v1539_v8  ;;  %1621 = vmatpush1.msra.mxu0 %v3298_v16  ;;  %v3330_v8 = vld [vmem:[%s5397_s3 + $0x1a0] sm:$0xff]  ;;  %v3327_v16 = vld [vmem:[%s5397_s3 + $0x188] sm:$0xff] }
 0x20f   : > { %1711 = vmatprep.subr.mxu1 %v1538_v9  ;;  %1622 = vmatprep.subr.mxu0 %v3297_v18  ;;  %v3349_v9 = vld [vmem:[%s5397_s3 + $0x218] sm:$0xff]  ;;  %v3326_v18 = vld [vmem:[%s5397_s3 + $0x180] sm:$0xff] }
 0x210   : > { %1712 = vmatpush1.msra.mxu1 %v1537_v10  ;;  %1623 = vmatpush1.msra.mxu0 %v3296_v19  ;;  %v3325_v19 = vld [vmem:[%s5397_s3 + $0x178] sm:$0xff] }
 0x211   : > { %1713 = vmatprep.subr.mxu1 %v1536_v12  ;;  %1624 = vmatprep.subr.mxu0 %v3295_v21  ;;  %v3348_v12 = vld [vmem:[%s5397_s3 + $0x210] sm:$0xff] }
 0x212   : > { %1714 = vmatpush1.msra.mxu1 %v1535_v15  ;;  %1625 = vmatpush1.msra.mxu0 %v3294_v22  ;;  %v3324_v21 = vld [vmem:[%s5397_s3 + $0x170] sm:$0xff]  ;;  %v3323_v22 = vld [vmem:[%s5397_s3 + $0x168] sm:$0xff] }
 0x213   : > { %3370 = vmatprep.subr.msk.mxu1 %vm1010_vm4, %v3369_v17  ;;  %1626 = vmatprep.subr.mxu0 %v3293_v23 }
 0x214   : > { %1627 = vmatpush1.msra.mxu0 %v3292_v25  ;;  %v3322_v25 = vld [vmem:[%s5397_s3 + $0x160] sm:$0xff] }
 0x215   : > { %3344 = vmatprep.subr.msk.mxu0 %vm1010_vm4, %v3343_v26 }
 0x2bb   : > { %v1427_v24 = vpop.f32.mrf.mxu0  ;;  %v1524_v27 = vpop.f32.mrf.mxu1 }
 0x2bc   : > { %v4579_v28 = vmax.f32 %v1427_v24, %v1524_v27  ;;  %v3395_v24 = vld [vmem:[%s5397_s3 + $0x368] sm:$0xf]  ;;  %v3394_v27 = vld [vmem:[%s5397_s3 + $0x360] sm:$0xf] }
 0x2bd   : > { %v1429_v30 = vpop.f32.mrf.mxu0  ;;  %v1526_v31 = vpop.f32.mrf.mxu1 }
 0x2be   : > { %3320 = vmatmul.mubr.msk.f32.vlgmr.msra.gmra.mxu1 %vm1585_vm7, %v4579_v28  ;;  %v1582_v45 = vrot.slane %v4579_v28, 1  ;;  %v1900_v15 = vrot.slane %v4579_v28, 3  ;;  %v1783_v26 = vrot.slane %v4579_v28, 2  ;;  %v3393_v30 = vld [vmem:[%s5397_s3 + $0x358] sm:$0xff]  ;;  %v3392_v31 = vld [vmem:[%s5397_s3 + $0x350] sm:$0xff] }
 0x2bf   : > { %3371 = vmatpush1.msk.msra.mxu1 %vm1010_vm4, %v3368_v29  ;;  %v1432_v34 = vpop.f32.mrf.mxu0  ;;  %v1529_v35 = vpop.f32.mrf.mxu1  ;;  %1753 = vmatprep.mubr.f32.mxu1 %v3884_v4 }
 0x2c0   : > { %v4597_v37 = vmax.f32 %v1432_v34, %v1529_v35  ;;  %1925 = vmatprep.subr.mxu1 %v3367_v32  ;;  %v3391_v32 = vld [vmem:[%s5397_s3 + $0x348] sm:$0xff]  ;;  %v3389_v34 = vld [vmem:[%s5397_s3 + $0x338] sm:$0xff]  ;;  %v3388_v35 = vld [vmem:[%s5397_s3 + $0x330] sm:$0xff] }
 0x2c1   : > { %1926 = vmatpush1.msra.mxu1 %v3366_v33  ;;  %v1434_v39 = vpop.f32.mrf.mxu0  ;;  %v1531_v41 = vpop.f32.mrf.mxu1  ;;  %v3390_v33 = vld [vmem:[%s5397_s3 + $0x340] sm:$0xff] }
 0x2c2   : > { %1927 = vmatprep.subr.mxu1 %v3365_v36  ;;  %3321 = vmatmul.mubr.msk.f32.gmra.mxu1 %vm1585_vm7, %v4597_v37  ;;  %v1583_v46 = vrot.slane %v4597_v37, 1  ;;  %v1901_v10 = vrot.slane %v4597_v37, 3  ;;  %v1784_v23 = vrot.slane %v4597_v37, 2  ;;  %v3387_v36 = vld [vmem:[%s5397_s3 + $0x328] sm:$0xff]  ;;  %v3385_v39 = vld [vmem:[%s5397_s3 + $0x318] sm:$0xff]  ;;  %v3384_v41 = vld [vmem:[%s5397_s3 + $0x310] sm:$0xff] }
 0x2c3   : > { %1928 = vmatpush1.msra.mxu1 %v3364_v38  ;;  %1977 = vmatprep.mubr.f32.mxu1 %v3884_v4  ;;  %v3386_v38 = vld [vmem:[%s5397_s3 + $0x320] sm:$0xff] }
 0x2c4   : > { %1929 = vmatprep.subr.mxu1 %v3363_v42  ;;  %v1584_v49 = vsel %vm554_vm0, %v1582_v45, %v1583_v46  ;;  %v1902_v17 = vsel %vm888_vm2, %v1900_v15, %v1901_v10  ;;  %v1785_v29 = vsel %vm766_vm3, %v1783_v26, %v1784_v23  ;;  %v3383_v42 = vld [vmem:[%s5397_s3 + $0x308] sm:$0xff]  ;;  %v3381_v45 = vld [vmem:[%s5397_s3 + $0x2f8] sm:$0xff] }
 0x2c5   : > { %1930 = vmatpush1.msra.mxu1 %v3362_v44  ;;  %3316 = vmatmul.mubr.msk.f32.vlgmr.msra.gmra.mxu0 %vm1585_vm7, %v1584_v49  ;;  %v3382_v44 = vld [vmem:[%s5397_s3 + $0x300] sm:$0xff]  ;;  %v3377_v49 = vld [vmem:[%s5397_s3 + $0x2d8] sm:$0xff] }
 0x2c6   : > { %3345 = vmatpush1.msk.msra.mxu0 %vm1010_vm4, %v3342_v47  ;;  %1931 = vmatprep.subr.mxu1 %v3361_v48  ;;  %v3379_v47 = vld [vmem:[%s5397_s3 + $0x2e8] sm:$0xff]  ;;  %v3378_v48 = vld [vmem:[%s5397_s3 + $0x2e0] sm:$0xff] }
 0x2c7   : > { %1808 = vmatprep.subr.mxu0 %v3341_v50  ;;  %1932 = vmatpush1.msra.mxu1 %v3360_v51  ;;  %v3376_v50 = vld [vmem:[%s5397_s3 + $0x2d0] sm:$0xff]  ;;  %v3375_v51 = vld [vmem:[%s5397_s3 + $0x2c8] sm:$0xff] }
 0x2c8   : > { %1809 = vmatpush1.msra.mxu0 %v3340_v43  ;;  %1933 = vmatprep.subr.mxu1 %v3359_v52  ;;  %v2018_v43 = vrot.slane %v4597_v37, 4  ;;  %v3374_v52 = vld [vmem:[%s5397_s3 + $0x2c0] sm:$0xff]  ;;  %v3423_v37 = vld [vmem:[%s5408_s14 + $0x118] sm:$0xff] }
 0x2c9   : > { %1666 = vmatprep.mubr.f32.mxu0 %v3884_v4  ;;  %1810 = vmatprep.subr.mxu0 %v3339_v40  ;;  %v2017_v40 = vrot.slane %v4579_v28, 4  ;;  %v3422_v28 = vld [vmem:[%s5408_s14 + $0x110] sm:$0xff] }
 0x2ca   : > { %1934 = vmatpush1.msra.mxu1 %v3358_v54  ;;  %3317 = vmatmul.mubr.msk.f32.gmra.mxu0 %vm1585_vm7, %v1583_v46  ;;  %v3380_v46 = vld [vmem:[%s5397_s3 + $0x2f0] sm:$0xff] }
 0x2cb   : > { %1811 = vmatpush1.msra.mxu0 %v3338_v55  ;;  %1935 = vmatprep.subr.mxu1 %v3357_v53  ;;  %v2019_v54 = vsel %vm1010_vm4, %v2017_v40, %v2018_v43  ;;  %v3421_v55 = vld [vmem:[%s5408_s14 + $0x108] sm:$0xff]  ;;  %v3420_v53 = vld [vmem:[%s5408_s14 + $0x100] sm:$0xff] }
 0x2cc   : > { %1812 = vmatprep.subr.mxu0 %v3337_v56  ;;  %1936 = vmatpush1.msra.mxu1 %v3356_v57  ;;  %v3419_v56 = vld [vmem:[%s5408_s14 + $0xf8] sm:$0xff]  ;;  %v3418_v57 = vld [vmem:[%s5408_s14 + $0xf0] sm:$0xff] }
 0x2cd   : > { %1813 = vmatpush1.msra.mxu0 %v3336_v58  ;;  %1937 = vmatprep.subr.mxu1 %v3355_v59  ;;  %v3417_v58 = vld [vmem:[%s5408_s14 + $0xe8] sm:$0xff]  ;;  %v3416_v59 = vld [vmem:[%s5408_s14 + $0xe0] sm:$0xff] }
 0x2ce   : > { %1814 = vmatprep.subr.mxu0 %v3335_v60  ;;  %1938 = vmatpush1.msra.mxu1 %v3354_v61  ;;  %v3415_v60 = vld [vmem:[%s5408_s14 + $0xd8] sm:$0xff]  ;;  %v3414_v61 = vld [vmem:[%s5408_s14 + $0xd0] sm:$0xff] }
 0x2cf   : > { %1815 = vmatpush1.msra.mxu0 %v3334_v63  ;;  %1939 = vmatprep.subr.mxu1 %v3353_v0  ;;  %v3413_v63 = vld [vmem:[%s5408_s14 + $0xc8] sm:$0xff]  ;;  %v3412_v0 = vld [vmem:[%s5408_s14 + $0xc0] sm:$0xff] }
 0x2d0   : > { %1816 = vmatprep.subr.mxu0 %v3333_v1  ;;  %1940 = vmatpush1.msra.mxu1 %v3352_v2  ;;  %v3411_v1 = vld [vmem:[%s5408_s14 + $0xb8] sm:$0xff]  ;;  %v3410_v2 = vld [vmem:[%s5408_s14 + $0xb0] sm:$0xff] }
 0x2d1   : > { %1817 = vmatpush1.msra.mxu0 %v3332_v3  ;;  %1941 = vmatprep.subr.mxu1 %v3351_v5  ;;  %v3409_v3 = vld [vmem:[%s5408_s14 + $0xa8] sm:$0xff] }
 0x2d2   : > { %1818 = vmatprep.subr.mxu0 %v3331_v6  ;;  %1942 = vmatpush1.msra.mxu1 %v3350_v7 }
 0x2d3   : > { %1819 = vmatpush1.msra.mxu0 %v3330_v8  ;;  %1943 = vmatprep.subr.mxu1 %v3349_v9 }
 0x2d4   : > { %1820 = vmatprep.subr.mxu0 %v3329_v11  ;;  %1944 = vmatpush1.msra.mxu1 %v3348_v12 }
 0x2d5   : > { %1821 = vmatpush1.msra.mxu0 %v3328_v13  ;;  %3372 = vmatmul.mubr.msk.f32.vlgmr.msra.gmra.mxu1 %vm1585_vm7, %v1902_v17 }
 0x2d6   : > { %1822 = vmatprep.subr.mxu0 %v3327_v16  ;;  %1983 = vmatprep.mubr.f32.mxu1 %v3884_v4 }
 0x2d7   : > { %1823 = vmatpush1.msra.mxu0 %v3326_v18  ;;  %1860 = vmatprep.mubr.f32.mxu0 %v3884_v4 }
 0x2d8   : > { %1824 = vmatprep.subr.mxu0 %v3325_v19 }
 0x2d9   : > { %1825 = vmatpush1.msra.mxu0 %v3324_v21  ;;  %3373 = vmatmul.mubr.msk.f32.gmra.mxu1 %vm1585_vm7, %v1901_v10 }
 0x2da   : > { %1826 = vmatprep.subr.mxu0 %v3323_v22  ;;  %2207 = vmatprep.mubr.f32.mxu1 %v3884_v4 }
 0x2db   : > { %1827 = vmatpush1.msra.mxu0 %v3322_v25 }
 0x2dc   : > { %3346 = vmatmul.mubr.msk.f32.vlgmr.msra.gmra.mxu0 %vm1585_vm7, %v1785_v29  ;;  %3396 = vmatprep.subr.msk.mxu0 %vm1010_vm4, %v3395_v24 }
 0x2dd   : > { %3397 = vmatpush1.msk.msra.mxu0 %vm1010_vm4, %v3394_v27  ;;  %1866 = vmatprep.mubr.f32.mxu0 %v3884_v4 }
 0x2de   : > { %2042 = vmatprep.subr.mxu0 %v3393_v30 }
 0x2df   : > { %2043 = vmatpush1.msra.mxu0 %v3392_v31 }
 0x2e0   : > { %3347 = vmatmul.mubr.msk.f32.gmra.mxu0 %vm1585_vm7, %v1784_v23  ;;  %2044 = vmatprep.subr.mxu0 %v3391_v32 }
 0x2e1   : > { %2045 = vmatpush1.msra.mxu0 %v3390_v33  ;;  %2094 = vmatprep.mubr.f32.mxu0 %v3884_v4  ;;  %v2111_v33 = vld [vmem:[%s5398_s4] sm:$0x3] }
 0x2e2   : > { %2046 = vmatprep.subr.mxu0 %v3389_v34 }
 0x2e3   : > { %2047 = vmatpush1.msra.mxu0 %v3388_v35 }
 0x2e4   : > { %2048 = vmatprep.subr.mxu0 %v3387_v36 }
 0x2e5   : > { %2049 = vmatpush1.msra.mxu0 %v3386_v38 }
 0x2e6   : > { %2050 = vmatprep.subr.mxu0 %v3385_v39 }
 0x2e7   : > { %2051 = vmatpush1.msra.mxu0 %v3384_v41 }
 0x2e8   : > { %2052 = vmatprep.subr.mxu0 %v3383_v42  ;;  %v2120_v42 = vrot.slane %v2111_v33, %v1131_v20  ;;  %v2131_v20 = vld [vmem:[%s5407_s13] sm:$0x1f] }
 0x2e9   : > { %2053 = vmatpush1.msra.mxu0 %v3382_v44 }
 0x2ea   : > { %2054 = vmatprep.subr.mxu0 %v3381_v45 }
 0x2eb   : > { %2055 = vmatpush1.msra.mxu0 %v3380_v46 }
 0x2ec   : > { %2056 = vmatprep.subr.mxu0 %v3379_v47  ;;  %v2116_v47 = vrot.slane %v2111_v33, %v1127_v14  ;;  %v2307_v14 = vld [vmem:[%s5408_s14 + $0x78] sm:$0xff]  ;;  %v2482_v33 = vld [vmem:[%s5399_s5 + $0x28] sm:$0xff] }
 0x2ed   : > { %2057 = vmatpush1.msra.mxu0 %v3378_v48 }
 0x2ee   : > { %2058 = vmatprep.subr.mxu0 %v3377_v49 }
 0x2ef   : > { %2059 = vmatpush1.msra.mxu0 %v3376_v50 }
 0x2f0   : > { %2060 = vmatprep.subr.mxu0 %v3375_v51 }
 0x2f1   : > { %2061 = vmatpush1.msra.mxu0 %v3374_v52 }
 0x2f2   : > { %3398 = vmatmul.mubr.msk.f32.vlgmr.msra.gmra.mxu0 %vm1585_vm7, %v2019_v54  ;;  %2406 = vmatprep.subr.mxu0 %v3884_v4 }
 0x2f3   : > { %2100 = vmatprep.mubr.f32.mxu0 %v3884_v4  ;;  %2407 = vmatpush1.msra.mxu0 %v3423_v37 }
 0x2f4   : > { %2408 = vmatprep.subr.mxu0 %v3884_v4 }
 0x2f5   : > { %2409 = vmatpush1.msra.mxu0 %v3422_v28 }
 0x2f6   : > { %3399 = vmatmul.mubr.msk.f32.gmra.mxu0 %vm1585_vm7, %v2018_v43  ;;  %2410 = vmatprep.subr.mxu0 %v3884_v4 }
 0x2f7   : > { %2411 = vmatpush1.msra.mxu0 %v3421_v55  ;;  %v2306_v55 = vld [vmem:[%s5408_s14 + $0x70] sm:$0xff] }
 0x2f8   : > { %2412 = vmatprep.subr.mxu0 %v3884_v4 }
 0x2f9   : > { %2413 = vmatpush1.msra.mxu0 %v3420_v53  ;;  %v2305_v53 = vld [vmem:[%s5408_s14 + $0x68] sm:$0xff] }
 0x2fa   : > { %2414 = vmatprep.subr.mxu0 %v3884_v4 }
 0x2fb   : > { %2415 = vmatpush1.msra.mxu0 %v3419_v56  ;;  %v2304_v56 = vld [vmem:[%s5408_s14 + $0x60] sm:$0xff] }
 0x2fc   : > { %2416 = vmatprep.subr.mxu0 %v3884_v4 }
 0x2fd   : > { %2417 = vmatpush1.msra.mxu0 %v3418_v57  ;;  %v2303_v57 = vld [vmem:[%s5408_s14 + $0x58] sm:$0xff] }
 0x2fe   : > { %2418 = vmatprep.subr.mxu0 %v3884_v4 }
 0x2ff   : > { %2419 = vmatpush1.msra.mxu0 %v3417_v58  ;;  %v2302_v58 = vld [vmem:[%s5408_s14 + $0x50] sm:$0xff] }
 0x300   : > { %2420 = vmatprep.subr.mxu0 %v3884_v4 }
 0x301   : > { %2421 = vmatpush1.msra.mxu0 %v3416_v59  ;;  %v2301_v59 = vld [vmem:[%s5408_s14 + $0x48] sm:$0xff] }
 0x302   : > { %2422 = vmatprep.subr.mxu0 %v3884_v4 }
 0x303   : > { %2423 = vmatpush1.msra.mxu0 %v3415_v60  ;;  %v2300_v60 = vld [vmem:[%s5408_s14 + $0x40] sm:$0xff] }
 0x304   : > { %2424 = vmatprep.subr.mxu0 %v3884_v4 }
 0x305   : > { %2425 = vmatpush1.msra.mxu0 %v3414_v61  ;;  %v2299_v61 = vld [vmem:[%s5408_s14 + $0x38] sm:$0xff] }
 0x306   : > { %2426 = vmatprep.subr.mxu0 %v3884_v4 }
 0x307   : > { %2427 = vmatpush1.msra.mxu0 %v3413_v63  ;;  %v2298_v63 = vld [vmem:[%s5408_s14 + $0x30] sm:$0xff] }
 0x308   : > { %2428 = vmatprep.subr.mxu0 %v3884_v4 }
 0x309   : > { %2429 = vmatpush1.msra.mxu0 %v3412_v0  ;;  %v2297_v0 = vld [vmem:[%s5408_s14 + $0x28] sm:$0xff] }
 0x30a   : > { %2430 = vmatprep.subr.mxu0 %v3884_v4 }
 0x30b   : > { %2431 = vmatpush1.msra.mxu0 %v3411_v1  ;;  %v2296_v1 = vld [vmem:[%s5408_s14 + $0x20] sm:$0xff] }
 0x30c   : > { %2432 = vmatprep.subr.mxu0 %v3884_v4 }
 0x30d   : > { %2433 = vmatpush1.msra.mxu0 %v3410_v2  ;;  %v2295_v2 = vld [vmem:[%s5408_s14 + $0x18] sm:$0xff] }
 0x30e   : > { %2434 = vmatprep.subr.mxu0 %v3884_v4 }
 0x30f   : > { %2435 = vmatpush1.msra.mxu0 %v3409_v3  ;;  %v2294_v3 = vld [vmem:[%s5408_s14 + $0x10] sm:$0xff] }
 0x310   : > { %2436 = vmatprep.subr.mxu0 %v3884_v4 }
 0x37e   : > { %v1749_v7 = vpop.f32.mrf.mxu1 }
 0x380   : > { %v1751_v9 = vpop.f32.mrf.mxu1 }
 0x382   : > { %v1755_v11 = vpop.f32.mrf.mxu1 }
 0x384   : > { %v1757_v13 = vpop.f32.mrf.mxu1 }
 0x385   : > { %v1662_v5 = vpop.f32.mrf.mxu0 }
 0x386   : > { %v1750_v22 = vadd.f32 %v1749_v7, %v1662_v5  ;;  %v2293_v5 = vld [vmem:[%s5408_s14 + $0x8] sm:$0xff]  ;;  %v3408_v7 = vld [vmem:[%s5408_s14 + $0xa0] sm:$0xff] }
 0x387   : > { %v1664_v6 = vpop.f32.mrf.mxu0  ;;  %2437 = vmatpush1.msra.mxu0 %v3408_v7  ;;  %v3472_v7 = vld [vmem:[%s5399_s5 + $0x188] sm:$0xff] }
 0x388   : > { %v1752_v19 = vadd.f32 %v1751_v9, %v1664_v6  ;;  %v2292_v6 = vld [vmem:[%s5408_s14] sm:$0xff]  ;;  %2462 = vmatprep.subr.mxu0 %v3884_v4  ;;  %v3427_v9 = vld [vmem:[%s5408_s14 + $0x138] sm:$0xff] }
 0x389   : > { %2463 = vmatpush2.msra.mxu0 %v3427_v9  ;;  %v3470_v9 = vld [vmem:[%s5399_s5 + $0x178] sm:$0xff] }
 0x38a   : > { %v1668_v8 = vpop.f32.mrf.mxu0  ;;  %2464 = vmatprep.subr.mxu0 %v3884_v4 }
 0x38b   : > { %v1756_v21 = vadd.f32 %v1755_v11, %v1668_v8  ;;  %v2311_v8 = vld [vmem:[%s5408_s14 + $0x98] sm:$0xff]  ;;  %v3426_v11 = vld [vmem:[%s5408_s14 + $0x130] sm:$0xff] }
 0x38c   : > { %v1670_v10 = vpop.f32.mrf.mxu0  ;;  %2465 = vmatpush2.msra.mxu0 %v3426_v11  ;;  %v3468_v11 = vld [vmem:[%s5399_s5 + $0x168] sm:$0xff] }
 0x38d   : > { %v1758_v25 = vadd.f32 %v1757_v13, %v1670_v10  ;;  %v2310_v10 = vld [vmem:[%s5408_s14 + $0x90] sm:$0xff]  ;;  %2466 = vmatprep.subr.mxu0 %v3884_v4  ;;  %v3425_v13 = vld [vmem:[%s5408_s14 + $0x128] sm:$0xff] }
 0x38e   : > { %2467 = vmatpush2.msra.mxu0 %v3425_v13  ;;  %v3466_v13 = vld [vmem:[%s5399_s5 + $0x158] sm:$0xff] }
 0x38f   : > { %2468 = vmatprep.subr.mxu0 %v3884_v4 }
 0x395   : > { %v1979_v16 = vpop.f32.mrf.mxu1 }
 0x397   : > { %v1981_v18 = vpop.f32.mrf.mxu1 }
 0x399   : > { %v1985_v27 = vpop.f32.mrf.mxu1 }
 0x39b   : > { %v1987_v36 = vpop.f32.mrf.mxu1 }
 0x39c   : > { %v1862_v12 = vpop.f32.mrf.mxu0 }
 0x39d   : > { %v1873_v29 = vadd.f32 %v1862_v12, %v1750_v22  ;;  %v2309_v12 = vld [vmem:[%s5408_s14 + $0x88] sm:$0xff] }
 0x39e   : > { %v1864_v15 = vpop.f32.mrf.mxu0 }
 0x39f   : > { %v1874_v26 = vadd.f32 %v1864_v15, %v1752_v19  ;;  %v1990_v38 = vadd.f32 %v1979_v16, %v1873_v29  ;;  %v2308_v15 = vld [vmem:[%s5408_s14 + $0x80] sm:$0xff]  ;;  %v2484_v29 = vld [vmem:[%s5399_s5 + $0x38] sm:$0xff] }
 0x3a0   : > { %v1868_v17 = vpop.f32.mrf.mxu0  ;;  %v3424_v16 = vld [vmem:[%s5408_s14 + $0x120] sm:$0xff] }
 0x3a1   : > { %v1875_v24 = vadd.f32 %v1868_v17, %v1756_v21  ;;  %v1991_v34 = vadd.f32 %v1981_v18, %v1874_v26  ;;  %2469 = vmatpush2.msra.mxu0 %v3424_v16  ;;  %v3438_v26 = vld [vmem:[%s5399_s5 + $0x98] sm:$0xff]  ;;  %v3464_v16 = vld [vmem:[%s5399_s5 + $0x148] sm:$0xff] }
 0x3a2   : > { %v1870_v23 = vpop.f32.mrf.mxu0  ;;  %3588 = vmatprep.subr.mxu0 %v3884_v4 }
 0x3a3   : > { %v1876_v31 = vadd.f32 %v1870_v23, %v1758_v25  ;;  %v1992_v35 = vadd.f32 %v1985_v27, %v1875_v24  ;;  %v2486_v25 = vld [vmem:[%s5399_s5 + $0x48] sm:$0xff]  ;;  %v2485_v24 = vld [vmem:[%s5399_s5 + $0x40] sm:$0xff]  ;;  %v3437_v27 = vld [vmem:[%s5399_s5 + $0x90] sm:$0xff] }
 0x3a5   : > { %v1993_v45 = vadd.f32 %v1987_v36, %v1876_v31  ;;  %v2483_v31 = vld [vmem:[%s5399_s5 + $0x30] sm:$0xff] }
 0x3a6   : > { %v3433_v36 = vld [vmem:[%s5399_s5 + $0x70] sm:$0xff] }
 0x3b2   : > { %v2096_v30 = vpop.f32.mrf.mxu0 }
 0x3b3   : > { %v2107_v46 = vadd.f32 %v2096_v30, %v1990_v38  ;;  %v3436_v30 = vld [vmem:[%s5399_s5 + $0x88] sm:$0xff]  ;;  %v2480_v38 = vld [vmem:[%s5399_s5 + $0x18] sm:$0xff] }
 0x3b4   : > { %v2098_v32 = vpop.f32.mrf.mxu0 }
 0x3b5   : > { %v2108_v41 = vadd.f32 %v2098_v32, %v1991_v34  ;;  %v2123_v52 = vadd.f32 %v2116_v47, %v2107_v46  ;;  %v3435_v32 = vld [vmem:[%s5399_s5 + $0x80] sm:$0xff]  ;;  %v3434_v34 = vld [vmem:[%s5399_s5 + $0x78] sm:$0xff] }
 0x3b6   : > { %v2102_v39 = vpop.f32.mrf.mxu0  ;;  %v2477_v46 = vld [vmem:[%s5399_s5] sm:$0xff] }
 0x3b7   : > { %v2109_v44 = vadd.f32 %v2102_v39, %v1992_v35  ;;  %v2124_v51 = vadd.f32 %v2120_v42, %v2108_v41  ;;  %v2127_v28 = vmax.f32 %v2123_v52, 0.0  ;;  %v2481_v35 = vld [vmem:[%s5399_s5 + $0x20] sm:$0xff]  ;;  %v3432_v39 = vld [vmem:[%s5399_s5 + $0x68] sm:$0xff]  ;;  %v2479_v41 = vld [vmem:[%s5399_s5 + $0x10] sm:$0xff] }
 0x3b8   : > { %v2104_v48 = vpop.f32.mrf.mxu0 }
 0x3b9   : > { %v2110_v49 = vadd.f32 %v2104_v48, %v1993_v45  ;;  %v2125_v50 = vadd.f32 %v2116_v47, %v2109_v44  ;;  %v2128_v37 = vmax.f32 %v2124_v51, 0.0  ;;  %v2478_v44 = vld [vmem:[%s5399_s5 + $0x8] sm:$0xff]  ;;  %v3430_v45 = vld [vmem:[%s5399_s5 + $0x58] sm:$0xff]  ;;  %v3429_v47 = vld [vmem:[%s5399_s5 + $0x50] sm:$0xff] }
 0x3ba   : > { %v3461_v51 = vld [vmem:[%s5399_s5 + $0x138] sm:$0xff] }
 0x3bb   : > { %v2126_v43 = vadd.f32 %v2120_v42, %v2110_v49  ;;  %v2129_v54 = vmax.f32 %v2125_v50, 0.0  ;;  %v3431_v42 = vld [vmem:[%s5399_s5 + $0x60] sm:$0xff] }
 0x3bd   : > { %v2130_v40 = vmax.f32 %v2126_v43, 0.0 }
 0x3bf   : > { %3400 = vmatprep.subr.msk.mxu1 %vm2136_vm8, %v2130_v40 }
 0x3c0   : > { %3401 = vmatpush1.msk.msra.mxu1 %vm2136_vm8, %v2129_v54 }
 0x3c1   : > { %2173 = vmatprep.subr.mxu1 %v2128_v37 }
 0x3c2   : > { %2174 = vmatpush1.msra.mxu1 %v2127_v28 }
 0x3c3   : > { %3402 = vmatmul.mubr.msk.f32.vlgmr.msra.gmra.mxu1 %vm2132_vm9, %v2131_v20  ;;  %3404 = vmatprep.subr.msk.mxu1 %vm2136_vm8, %v2130_v40  ;;  %v3459_v20 = vld [vmem:[%s5399_s5 + $0x128] sm:$0xff] }
 0x3c4   : > { %3405 = vmatpush1.msk.msra.mxu1 %vm2136_vm8, %v2129_v54  ;;  %2283 = vmatprep.mubr.f32.mxu1 %v3884_v4  ;;  %v3450_v54 = vld [vmem:[%s5399_s5 + $0xe8] sm:$0xff] }
 0x3c5   : > { %2249 = vmatprep.subr.mxu1 %v2128_v37  ;;  %v3460_v37 = vld [vmem:[%s5399_s5 + $0x130] sm:$0xff] }
 0x3c6   : > { %2250 = vmatpush1.msra.mxu1 %v2127_v28  ;;  %v3449_v28 = vld [vmem:[%s5399_s5 + $0xe0] sm:$0xff] }
 0x3c7   : > { %3406 = vmatmul.mubr.msk.f32.vlgmr.msra.gmra.mxu1 %vm2132_vm9, %v3403_v62  ;;  %2315 = vmatprep.subr.mxu1 %v3884_v4  ;;  %v3448_v62 = vld [vmem:[%s5399_s5 + $0xd8] sm:$0xff] }
 0x3c8   : > { %2316 = vmatpush1.msra.mxu1 %v2307_v14  ;;  %v3458_v14 = vld [vmem:[%s5399_s5 + $0x120] sm:$0xff] }
 0x3c9   : > { %2317 = vmatprep.subr.mxu1 %v3884_v4 }
 0x3ca   : > { %2318 = vmatpush1.msra.mxu1 %v2306_v55  ;;  %v3447_v55 = vld [vmem:[%s5399_s5 + $0xd0] sm:$0xff] }
 0x3cb   : > { %2319 = vmatprep.subr.mxu1 %v3884_v4 }
 0x3cc   : > { %2320 = vmatpush1.msra.mxu1 %v2305_v53  ;;  %v3457_v53 = vld [vmem:[%s5399_s5 + $0x118] sm:$0xff] }
 0x3cd   : > { %2321 = vmatprep.subr.mxu1 %v3884_v4 }
 0x3ce   : > { %2322 = vmatpush1.msra.mxu1 %v2304_v56  ;;  %v3446_v56 = vld [vmem:[%s5399_s5 + $0xc8] sm:$0xff] }
 0x3cf   : > { %2323 = vmatprep.subr.mxu1 %v3884_v4 }
 0x3d0   : > { %2324 = vmatpush1.msra.mxu1 %v2303_v57  ;;  %v3456_v57 = vld [vmem:[%s5399_s5 + $0x110] sm:$0xff] }
 0x3d1   : > { %2325 = vmatprep.subr.mxu1 %v3884_v4 }
 0x3d2   : > { %2326 = vmatpush1.msra.mxu1 %v2302_v58  ;;  %v3445_v58 = vld [vmem:[%s5399_s5 + $0xc0] sm:$0xff] }
 0x3d3   : > { %2327 = vmatprep.subr.mxu1 %v3884_v4 }
 0x3d4   : > { %2328 = vmatpush1.msra.mxu1 %v2301_v59  ;;  %v3455_v59 = vld [vmem:[%s5399_s5 + $0x108] sm:$0xff] }
 0x3d5   : > { %2329 = vmatprep.subr.mxu1 %v3884_v4 }
 0x3d6   : > { %2330 = vmatpush1.msra.mxu1 %v2300_v60  ;;  %v3444_v60 = vld [vmem:[%s5399_s5 + $0xb8] sm:$0xff] }
 0x3d7   : > { %2331 = vmatprep.subr.mxu1 %v3884_v4 }
 0x3d8   : > { %2332 = vmatpush1.msra.mxu1 %v2299_v61  ;;  %v3454_v61 = vld [vmem:[%s5399_s5 + $0x100] sm:$0xff] }
 0x3d9   : > { %2333 = vmatprep.subr.mxu1 %v3884_v4 }
 0x3da   : > { %2334 = vmatpush1.msra.mxu1 %v2298_v63  ;;  %v3443_v63 = vld [vmem:[%s5399_s5 + $0xb0] sm:$0xff] }
 0x3db   : > { %2335 = vmatprep.subr.mxu1 %v3884_v4 }
 0x3dc   : > { %2336 = vmatpush1.msra.mxu1 %v2297_v0  ;;  %v3453_v0 = vld [vmem:[%s5399_s5 + $0xf8] sm:$0xff] }
 0x3dd   : > { %2337 = vmatprep.subr.mxu1 %v3884_v4 }
 0x3de   : > { %2338 = vmatpush1.msra.mxu1 %v2296_v1  ;;  %v3442_v1 = vld [vmem:[%s5399_s5 + $0xa8] sm:$0xff] }
 0x3df   : > { %2339 = vmatprep.subr.mxu1 %v3884_v4 }
 0x3e0   : > { %2340 = vmatpush1.msra.mxu1 %v2295_v2  ;;  %v3452_v2 = vld [vmem:[%s5399_s5 + $0xf0] sm:$0xff] }
 0x3e1   : > { %2341 = vmatprep.subr.mxu1 %v3884_v4 }
 0x3e2   : > { %2342 = vmatpush1.msra.mxu1 %v2294_v3 }
 0x3e3   : > { %2343 = vmatprep.subr.mxu1 %v3884_v4 }
 0x3e4   : > { %2344 = vmatpush1.msra.mxu1 %v2293_v5  ;;  %v3441_v5 = vld [vmem:[%s5399_s5 + $0xa0] sm:$0xff] }
 0x3e5   : > { %2345 = vmatprep.subr.mxu1 %v3884_v4 }
 0x3e6   : > { %2346 = vmatpush1.msra.mxu1 %v2292_v6 }
 0x3e7   : > { %2371 = vmatprep.subr.mxu1 %v3884_v4 }
 0x3e8   : > { %2372 = vmatpush2.msra.mxu1 %v2311_v8  ;;  %v3471_v8 = vld [vmem:[%s5399_s5 + $0x180] sm:$0xff] }
 0x3e9   : > { %2373 = vmatprep.subr.mxu1 %v3884_v4 }
 0x3ea   : > { %2374 = vmatpush2.msra.mxu1 %v2310_v10  ;;  %v3469_v10 = vld [vmem:[%s5399_s5 + $0x170] sm:$0xff] }
 0x3eb   : > { %2375 = vmatprep.subr.mxu1 %v3884_v4 }
 0x3ec   : > { %2376 = vmatpush2.msra.mxu1 %v2309_v12  ;;  %v3467_v12 = vld [vmem:[%s5399_s5 + $0x160] sm:$0xff] }
 0x3ed   : > { %2377 = vmatprep.subr.mxu1 %v3884_v4 }
 0x3ee   : > { %2378 = vmatpush2.msra.mxu1 %v2308_v15  ;;  %v3465_v15 = vld [vmem:[%s5399_s5 + $0x150] sm:$0xff] }
 0x3ef   : > { %3565 = vmatprep.subr.mxu1 %v3884_v4 }
 0x483   : > { %v2209_v17 = vpop.f32.mrf.mxu1 }
 0x485   : > { %v2211_v18 = vpop.f32.mrf.mxu1 }
 0x487   : > { %v2285_v19 = vpop.f32.mrf.mxu1 }
 0x488   : > { %v2290_v23 = vmax.f32 %v2209_v17, %v2285_v19  ;;  %v3463_v17 = vld [vmem:[%s5399_s5 + $0x140] sm:$0xff]  ;;  %v2919_v19 = vld [vmem:[%s5401_s7 + $0x70] sm:$0xff] }
 0x489   : > { %v2287_v21 = vpop.f32.mrf.mxu1 }
 0x48a   : > { %v2291_v22 = vmax.f32 %v2211_v18, %v2287_v21  ;;  %v2918_v21 = vld [vmem:[%s5401_s7 + $0x68] sm:$0xff] }
 0x48c   : > { %3407 = vmatprep.mubr.msk.f32.mxu1 %vm562_vm1, %v2291_v22  ;;  %3428 = vmatprep.mubr.msk.f32.mxu0 %vm562_vm1, %v2291_v22  ;;  %v2917_v22 = vld [vmem:[%s5401_s7 + $0x60] sm:$0xff] }
 0x48d   : > { %2380 = vmatmul.mubr.f32.vlgmr.msra.gmra.mxu1 %v2290_v23  ;;  %2471 = vmatmul.mubr.f32.vlgmr.msra.gmra.mxu0 %v2290_v23  ;;  %v2916_v23 = vld [vmem:[%s5401_s7 + $0x58] sm:$0xff] }
 0x48e   : > { %3589 = vmatpush3.msra.mxu0 %v2486_v25  ;;  %3566 = vmatpush3.msra.mxu1 %v3438_v26  ;;  %v2915_v25 = vld [vmem:[%s5401_s7 + $0x50] sm:$0xff]  ;;  %v2914_v26 = vld [vmem:[%s5401_s7 + $0x48] sm:$0xff] }
 0x48f   : > { %3590 = vmatprep.subr.mxu0 %v3884_v4  ;;  %3567 = vmatprep.subr.mxu1 %v3884_v4 }
 0x490   : > { %3591 = vmatpush3.msra.mxu0 %v2485_v24  ;;  %3568 = vmatpush3.msra.mxu1 %v3437_v27  ;;  %v2913_v24 = vld [vmem:[%s5401_s7 + $0x40] sm:$0xff]  ;;  %v2912_v27 = vld [vmem:[%s5401_s7 + $0x38] sm:$0xff] }
 0x491   : > { %3592 = vmatprep.subr.mxu0 %v3884_v4  ;;  %3569 = vmatprep.subr.mxu1 %v3884_v4 }
 0x492   : > { %3593 = vmatpush3.msra.mxu0 %v2484_v29  ;;  %3570 = vmatpush3.msra.mxu1 %v3436_v30  ;;  %v2911_v29 = vld [vmem:[%s5401_s7 + $0x30] sm:$0xff]  ;;  %v2910_v30 = vld [vmem:[%s5401_s7 + $0x28] sm:$0xff] }
 0x493   : > { %3594 = vmatprep.subr.mxu0 %v3884_v4  ;;  %3571 = vmatprep.subr.mxu1 %v3884_v4 }
 0x494   : > { %3595 = vmatpush3.msra.mxu0 %v2483_v31  ;;  %3572 = vmatpush3.msra.mxu1 %v3435_v32  ;;  %v2909_v31 = vld [vmem:[%s5401_s7 + $0x20] sm:$0xff]  ;;  %v2908_v32 = vld [vmem:[%s5401_s7 + $0x18] sm:$0xff] }
 0x495   : > { %3596 = vmatprep.subr.mxu0 %v3884_v4  ;;  %3573 = vmatprep.subr.mxu1 %v3884_v4 }
 0x496   : > { %3597 = vmatpush3.msra.mxu0 %v2482_v33  ;;  %3574 = vmatpush3.msra.mxu1 %v3434_v34  ;;  %v2907_v33 = vld [vmem:[%s5401_s7 + $0x10] sm:$0xff]  ;;  %v2906_v34 = vld [vmem:[%s5401_s7 + $0x8] sm:$0xff] }
 0x497   : > { %3598 = vmatprep.subr.mxu0 %v3884_v4  ;;  %3575 = vmatprep.subr.mxu1 %v3884_v4 }
 0x498   : > { %3599 = vmatpush3.msra.mxu0 %v2481_v35  ;;  %3576 = vmatpush3.msra.mxu1 %v3433_v36  ;;  %v2905_v35 = vld [vmem:[%s5401_s7] sm:$0xff]  ;;  %v3006_v36 = vld [vmem:[%s5403_s9 + $0x50] sm:$0xf] }
 0x499   : > { %3600 = vmatprep.subr.mxu0 %v3884_v4  ;;  %3577 = vmatprep.subr.mxu1 %v3884_v4 }
 0x49a   : > { %3601 = vmatpush3.msra.mxu0 %v2480_v38  ;;  %3578 = vmatpush3.msra.mxu1 %v3432_v39  ;;  %v3005_v38 = vld [vmem:[%s5403_s9 + $0x48] sm:$0xff]  ;;  %v3004_v39 = vld [vmem:[%s5403_s9 + $0x40] sm:$0xff] }
 0x49b   : > { %3602 = vmatprep.subr.mxu0 %v3884_v4  ;;  %3579 = vmatprep.subr.mxu1 %v3884_v4 }
 0x49c   : > { %3603 = vmatpush3.msra.mxu0 %v2479_v41  ;;  %3580 = vmatpush3.msra.mxu1 %v3431_v42  ;;  %v3003_v41 = vld [vmem:[%s5403_s9 + $0x38] sm:$0xff]  ;;  %v3002_v42 = vld [vmem:[%s5403_s9 + $0x30] sm:$0xff] }
 0x49d   : > { %3604 = vmatprep.subr.mxu0 %v3884_v4  ;;  %3581 = vmatprep.subr.mxu1 %v3884_v4 }
 0x49e   : > { %3605 = vmatpush3.msra.mxu0 %v2478_v44  ;;  %3582 = vmatpush3.msra.mxu1 %v3430_v45  ;;  %v3001_v44 = vld [vmem:[%s5403_s9 + $0x28] sm:$0xff]  ;;  %v3000_v45 = vld [vmem:[%s5403_s9 + $0x20] sm:$0xff] }
 0x49f   : > { %3606 = vmatprep.subr.mxu0 %v3884_v4  ;;  %3583 = vmatprep.subr.mxu1 %v3884_v4 }
 0x4a0   : > { %3607 = vmatpush3.msra.mxu0 %v2477_v46  ;;  %3608 = vmatprep.mubr.msk.f32.mxu0 %vm3885_vm10, %v3884_v4  ;;  %v2999_v46 = vld [vmem:[%s5403_s9 + $0x18] sm:$0xff] }
 0x4a1   : > { %3634 = vmatprep.subr.mxu0 %v3884_v4  ;;  %3584 = vmatpush3.msra.mxu1 %v3429_v47 }
 0x4a2   : > { %3585 = vmatprep.mubr.msk.f32.mxu1 %vm3885_vm10, %v3884_v4  ;;  %3611 = vmatprep.subr.mxu1 %v3884_v4 }
 0x54d   : > { %v2381_v48 = vpop.f32.mrf.mxu1  ;;  %v2472_v49 = vpop.f32.mrf.mxu0 }
 0x54e   : > { %v5074_v50 = vmax.f32 %v2381_v48, %v2472_v49 }
 0x54f   : > { %v2383_v43 = vpop.f32.mrf.mxu1  ;;  %v2474_v52 = vpop.f32.mrf.mxu0 }
 0x550   : > { %3609 = vmatmul.mubr.msk.f32.vlgmr.msra.gmra.mxu0 %vm2500_vm11, %v5074_v50  ;;  %v2499_v40 = vrot.slane %v5074_v50, 1  ;;  %v2741_v3 = vrot.slane %v5074_v50, 3  ;;  %v2656_v6 = vrot.slane %v5074_v50, 2  ;;  %v2826_v18 = vrot.slane %v5074_v50, 4 }
 0x551   : > { %3635 = vmatpush3.msra.mxu0 %v3461_v51  ;;  %3654 = vmatprep.mubr.msk.f32.mxu0 %vm3885_vm10, %v3884_v4 }
 0x552   : > { %3636 = vmatprep.subr.mxu0 %v3884_v4  ;;  %3586 = vmatmul.mubr.msk.f32.vlgmr.msra.gmra.mxu1 %vm2500_vm11, %v2499_v40 }
 0x553   : > { %3612 = vmatpush3.msra.mxu1 %v3450_v54  ;;  %3637 = vmatpush3.msra.mxu0 %v3460_v37 }
 0x554   : > { %3613 = vmatprep.subr.mxu1 %v3884_v4  ;;  %3638 = vmatprep.subr.mxu0 %v3884_v4 }
 0x555   : > { %3614 = vmatpush3.msra.mxu1 %v3449_v28  ;;  %3639 = vmatpush3.msra.mxu0 %v3459_v20 }
 0x556   : > { %3615 = vmatprep.subr.mxu1 %v3884_v4  ;;  %3640 = vmatprep.subr.mxu0 %v3884_v4 }
 0x557   : > { %3616 = vmatpush3.msra.mxu1 %v3448_v62  ;;  %3641 = vmatpush3.msra.mxu0 %v3458_v14  ;;  %v2900_v62 = vld [vmem:[%s5400_s6] sm:$0x1] }
 0x558   : > { %3617 = vmatprep.subr.mxu1 %v3884_v4  ;;  %3642 = vmatprep.subr.mxu0 %v3884_v4 }
 0x559   : > { %3618 = vmatpush3.msra.mxu1 %v3447_v55  ;;  %3643 = vmatpush3.msra.mxu0 %v3457_v53 }
 0x55a   : > { %3619 = vmatprep.subr.mxu1 %v3884_v4  ;;  %3644 = vmatprep.subr.mxu0 %v3884_v4 }
 0x55b   : > { %3620 = vmatpush3.msra.mxu1 %v3446_v56  ;;  %3645 = vmatpush3.msra.mxu0 %v3456_v57  ;;  %v2998_v57 = vld [vmem:[%s5403_s9 + $0x10] sm:$0xff] }
 0x55c   : > { %3621 = vmatprep.subr.mxu1 %v3884_v4  ;;  %3646 = vmatprep.subr.mxu0 %v3884_v4 }
 0x55d   : > { %3622 = vmatpush3.msra.mxu1 %v3445_v58  ;;  %3647 = vmatpush3.msra.mxu0 %v3455_v59  ;;  %v2997_v58 = vld [vmem:[%s5403_s9 + $0x8] sm:$0xff]  ;;  %v2996_v59 = vld [vmem:[%s5403_s9] sm:$0xff] }
 0x55e   : > { %3623 = vmatprep.subr.mxu1 %v3884_v4  ;;  %3648 = vmatprep.subr.mxu0 %v3884_v4 }
 0x55f   : > { %3624 = vmatpush3.msra.mxu1 %v3444_v60  ;;  %3649 = vmatpush3.msra.mxu0 %v3454_v61  ;;  %v2920_v60 = vld [vmem:[%s5402_s8] sm:$0x1] }
 0x560   : > { %3625 = vmatprep.subr.mxu1 %v3884_v4  ;;  %3650 = vmatprep.subr.mxu0 %v3884_v4 }
 0x561   : > { %3626 = vmatpush3.msra.mxu1 %v3443_v63  ;;  %3651 = vmatpush3.msra.mxu0 %v3453_v0 }
 0x562   : > { %3627 = vmatprep.subr.mxu1 %v3884_v4  ;;  %3652 = vmatprep.subr.mxu0 %v3884_v4 }
 0x563   : > { %3628 = vmatpush3.msra.mxu1 %v3442_v1  ;;  %3653 = vmatpush3.msra.mxu0 %v3452_v2 }
 0x564   : > { %3629 = vmatprep.subr.mxu1 %v3884_v4  ;;  %3655 = vmatmul.mubr.msk.f32.vlgmr.msra.gmra.mxu0 %vm2500_vm11, %v2741_v3 }
 0x565   : > { %3630 = vmatpush3.msra.mxu1 %v3441_v5  ;;  %3631 = vmatprep.mubr.msk.f32.mxu1 %vm3885_vm10, %v3884_v4 }
 0x566   : > { %3632 = vmatmul.mubr.msk.f32.vlgmr.msra.gmra.mxu1 %vm2500_vm11, %v2656_v6  ;;  %3657 = vmatprep.subr.mxu1 %v3884_v4 }
 0x567   : > { %3658 = vmatpush3.msra.mxu1 %v3472_v7  ;;  %3677 = vmatprep.mubr.msk.f32.mxu1 %vm3885_vm10, %v3884_v4 }
 0x568   : > { %3659 = vmatprep.subr.mxu1 %v3884_v4  ;;  %3680 = vmatprep.subr.mxu0 %v3884_v4 }
 0x569   : > { %3660 = vmatpush3.msra.mxu1 %v3471_v8  ;;  %3710 = vmatprep.mubr.msk.f32.mxu0 %vm3885_vm10, %v3884_v4 }
 0x56a   : > { %3661 = vmatprep.subr.mxu1 %v3884_v4  ;;  %3681 = vmatpush3.msra.mxu0 %v2919_v19 }
 0x56b   : > { %3662 = vmatpush3.msra.mxu1 %v3470_v9  ;;  %3682 = vmatprep.subr.mxu0 %v3884_v4 }
 0x56c   : > { %3663 = vmatprep.subr.mxu1 %v3884_v4  ;;  %3683 = vmatpush3.msra.mxu0 %v2918_v21 }
 0x56d   : > { %3664 = vmatpush3.msra.mxu1 %v3469_v10  ;;  %3684 = vmatprep.subr.mxu0 %v3884_v4 }
 0x56e   : > { %3665 = vmatprep.subr.mxu1 %v3884_v4  ;;  %3685 = vmatpush3.msra.mxu0 %v2917_v22 }
 0x56f   : > { %3666 = vmatpush3.msra.mxu1 %v3468_v11  ;;  %3686 = vmatprep.subr.mxu0 %v3884_v4 }
 0x570   : > { %3667 = vmatprep.subr.mxu1 %v3884_v4  ;;  %3687 = vmatpush3.msra.mxu0 %v2916_v23 }
 0x571   : > { %3668 = vmatpush3.msra.mxu1 %v3467_v12  ;;  %3688 = vmatprep.subr.mxu0 %v3884_v4 }
 0x572   : > { %3669 = vmatprep.subr.mxu1 %v3884_v4  ;;  %3689 = vmatpush3.msra.mxu0 %v2915_v25 }
 0x573   : > { %3670 = vmatpush3.msra.mxu1 %v3466_v13  ;;  %3690 = vmatprep.subr.mxu0 %v3884_v4 }
 0x574   : > { %3671 = vmatprep.subr.mxu1 %v3884_v4  ;;  %3691 = vmatpush3.msra.mxu0 %v2914_v26 }
 0x575   : > { %3672 = vmatpush3.msra.mxu1 %v3465_v15  ;;  %3692 = vmatprep.subr.mxu0 %v3884_v4 }
 0x576   : > { %3673 = vmatprep.subr.mxu1 %v3884_v4  ;;  %3693 = vmatpush3.msra.mxu0 %v2913_v24 }
 0x577   : > { %3674 = vmatpush3.msra.mxu1 %v3464_v16  ;;  %3694 = vmatprep.subr.mxu0 %v3884_v4 }
 0x578   : > { %3675 = vmatprep.subr.mxu1 %v3884_v4  ;;  %3695 = vmatpush3.msra.mxu0 %v2912_v27 }
 0x579   : > { %3676 = vmatpush3.msra.mxu1 %v3463_v17  ;;  %3696 = vmatprep.subr.mxu0 %v3884_v4 }
 0x57a   : > { %3678 = vmatmul.mubr.msk.f32.vlgmr.msra.gmra.mxu1 %vm2500_vm11, %v2826_v18  ;;  %3713 = vmatprep.subr.mxu1 %v3884_v4 }
 0x57b   : > { %3735 = vmatprep.mubr.msk.f32.mxu1 %vm3885_vm10, %v3884_v4  ;;  %3697 = vmatpush3.msra.mxu0 %v2911_v29 }
 0x57c   : > { %3698 = vmatprep.subr.mxu0 %v3884_v4  ;;  %3714 = vmatpush3.msk.msra.mxu1 %vm1010_vm4, %v3006_v36 }
 0x57d   : > { %3699 = vmatpush3.msra.mxu0 %v2910_v30  ;;  %3715 = vmatprep.subr.mxu1 %v3884_v4 }
 0x57e   : > { %3700 = vmatprep.subr.mxu0 %v3884_v4  ;;  %3716 = vmatpush3.msra.mxu1 %v3005_v38 }
 0x57f   : > { %3701 = vmatpush3.msra.mxu0 %v2909_v31  ;;  %3717 = vmatprep.subr.mxu1 %v3884_v4 }
 0x580   : > { %3702 = vmatprep.subr.mxu0 %v3884_v4  ;;  %3718 = vmatpush3.msra.mxu1 %v3004_v39 }
 0x581   : > { %3703 = vmatpush3.msra.mxu0 %v2908_v32  ;;  %3719 = vmatprep.subr.mxu1 %v3884_v4 }
 0x582   : > { %3704 = vmatprep.subr.mxu0 %v3884_v4  ;;  %3720 = vmatpush3.msra.mxu1 %v3003_v41 }
 0x583   : > { %3705 = vmatpush3.msra.mxu0 %v2907_v33  ;;  %3721 = vmatprep.subr.mxu1 %v3884_v4 }
 0x584   : > { %3706 = vmatprep.subr.mxu0 %v3884_v4  ;;  %3722 = vmatpush3.msra.mxu1 %v3002_v42 }
 0x585   : > { %3707 = vmatpush3.msra.mxu0 %v2906_v34  ;;  %3723 = vmatprep.subr.mxu1 %v3884_v4 }
 0x586   : > { %3708 = vmatprep.subr.mxu0 %v3884_v4  ;;  %3724 = vmatpush3.msra.mxu1 %v3001_v44 }
 0x587   : > { %3709 = vmatpush3.msra.mxu0 %v2905_v35  ;;  %3725 = vmatprep.subr.mxu1 %v3884_v4 }
 0x588   : > { %3726 = vmatpush3.msra.mxu1 %v3000_v45 }
 0x589   : > { %3727 = vmatprep.subr.mxu1 %v3884_v4 }
 0x58a   : > { %3728 = vmatpush3.msra.mxu1 %v2999_v46 }
 0x58b   : > { %3729 = vmatprep.subr.mxu1 %v3884_v4 }
 0x58c   : > { %3730 = vmatpush3.msra.mxu1 %v2998_v57 }
 0x58d   : > { %3731 = vmatprep.subr.mxu1 %v3884_v4 }
 0x58e   : > { %3732 = vmatpush3.msra.mxu1 %v2997_v58 }
 0x58f   : > { %3733 = vmatprep.subr.mxu1 %v3884_v4 }
 0x590   : > { %3734 = vmatpush3.msra.mxu1 %v2996_v59 }
 0x610   : > { %v2641_v47 = vpop.f32.mrf.mxu0 }
 0x612   : > { %v2569_v48 = vpop.f32.mrf.mxu1  ;;  %v3610_v49 = vpop.f32.mrf.mxu0 }
 0x613   : > { %v2642_v54 = vadd.f32 %v2641_v47, %v2569_v48 }
 0x614   : > { %v3587_v50 = vpop.f32.mrf.mxu1 }
 0x624   : > { %v2810_v51 = vpop.f32.mrf.mxu0 }
 0x626   : > { %v2725_v43 = vpop.f32.mrf.mxu1  ;;  %v3656_v52 = vpop.f32.mrf.mxu0 }
 0x627   : > { %v2729_v37 = vadd.f32 %v2725_v43, %v2642_v54 }
 0x628   : > { %v3633_v40 = vpop.f32.mrf.mxu1 }
 0x629   : > { %v2814_v28 = vadd.f32 %v2810_v51, %v2729_v37 }
 0x63a   : > { %v2895_v20 = vpop.f32.mrf.mxu1 }
 0x63b   : > { %v2899_v14 = vadd.f32 %v2895_v20, %v2814_v28 }
 0x63c   : > { %v3679_v55 = vpop.f32.mrf.mxu1 }
 0x63d   : > { %v2901_v53 = vadd.f32 %v2900_v62, %v2899_v14 }
 0x63f   : > { %v2902_v56 = vmax.f32 %v2901_v53, 0.0 }
 0x641   : > { %3711 = vmatmul.mubr.msk.f32.vlgmr.msra.gmra.mxu0 %vm2921_vm12, %v2902_v56  ;;  %2904 = vst.msk [vmem:[%s523_s20] sm:$0x1] %vm2903_vm13, %v2902_v56 }
 0x701   : > { %v2991_v61 = vpop.f32.mrf.mxu0 }
 0x702   : > { %v2992_v63 = vadd.f32 %v2991_v61, %v2920_v60 }
 0x703   : > { %v3712_v0 = vpop.f32.mrf.mxu0 }
 0x704   : > { %v2995_v1 = vmax.f32 %v2992_v63, 0.0 }
 0x706   : > { %3736 = vmatmul.mubr.msk.f32.vlgmr.msra.gmra.mxu1 %vm1585_vm7, %v2995_v1 }
 0x707   : > { %3805 = shalt.err (!%p3802_p3)
}
 0x708   : > { %s3806_s27 = scalar_lea.hbm %s3114_s18, 16  ;;  %s3810_s30 = scalar_lea.hbm %s5410_s16, 32 }
 0x709   : > { %p3807_p4 = scmp.ne.s32.totalorder %s3114_s18, %s3806_s27  ;;  %p3811_p9 = scmp.lt.s32.totalorder %s3114_s18, %s5410_s16 }
 0x70a   : > { %p3812_p10 = scmp.lt.s32.totalorder %s3810_s30, %s3806_s27 }
 0x70b   : > { %p3808_p7 = pnand %p3807_p4, %p4011_p5 }
 0x70c   : > { %p3813_p11 = por %p3812_p10, %p3811_p9 }
 0x70d   : > { %p3809_p8 = pneg %p3808_p7 }
 0x70f   : > { %p3814_p12 = pnand %p3813_p11, %p3809_p8 }
 0x711   : > { %3817 = shalt.err (!%p3814_p12)
}
 0x712   : > { %3747 = dma.vmem_to_hbm [thread:$0]  (%p4011_p5), %s3117_s28, 16, %s3114_s18, %s3091_s26   ;;  %vm3084_vm14 = vcmask 73728  }
 0x713   : > { %s5433_s21 = sld [smem:[#allocation16_spill]]  ;;  %s517_s24 = scalar_lea.vmem [#allocation2], %s5312_s19 }
 0x714   : > { %s3103_s20 = sshll.u32 %s517_s24, 4  ;;  %s5434_s23 = sshll.u32 %s3994_s25, 4  ;;  %s3104_s20 = int_to_ptr.vmem [resolvable:$true] %s3103_s20 }
 0x715   : > { %s5435_s30 = sld [smem:[#allocation17_spill]]  ;;  %s3087_s1 = scalar_lea.sflag [#allocation3], %s5312_s19 }
 0x716   : > { %s3818_s18 = scalar_lea.vmem %s3104_s20, 16  ;;  %s3887_s28 = smov [#allocation2]  }
 0x717   : > { %p3819_p13 = scmp.ne.s32.totalorder %s3104_s20, %s3818_s18  ;;  %s3822_s26 = sshll.u32 %s3887_s28, 4  ;;  %s3823_s26 = int_to_ptr.vmem [resolvable:$false] %s3822_s26 }
 0x718   : > { %s3824_s10 = scalar_lea.vmem %s3823_s26, 32  ;;  %p3825_p2 = scmp.lt.s32.totalorder %s3104_s20, %s3823_s26 }
 0x719   : > { %v3007_v4 = vld [vmem:[%s5433_s21] sm:$0x1]  ;;  %p3820_p0 = pnand %p3819_p13, %p4011_p5  ;;  %p3826_p3 = scmp.lt.s32.totalorder %s3824_s10, %s3818_s18 }
 0x71b   : > { %s5358_s17 = scalar_lea.hbm %s5435_s30, %s5434_s23  ;;  %p3821_p1 = pneg %p3820_p0 }
 0x71c   : > { %p3827_p4 = por %p3826_p3, %p3825_p2 }
 0x71e   : > { %p3828_p7 = pnand %p3827_p4, %p3821_p1 }
 0x7c6   : > { %v3080_v2 = vpop.f32.mrf.mxu1 }
 0x7c7   : > { %v3081_v3 = vadd.f32 %v3080_v2, %v3007_v4 }
 0x7c8   : > { %v3737_v5 = vpop.f32.mrf.mxu1 }
 0x7c9   : > { %3085 = vst.msk [vmem:[%s517_s24] sm:$0x1] %vm3084_vm14, %v3081_v3 }
 0x7ca   : > { %3831 = shalt.err (!%p3828_p7)
}
 0x7cb   : > { %s3832_s25 = scalar_lea.hbm %s5358_s17, 16  ;;  %s3836_s21 = scalar_lea.hbm %s5435_s30, 32 }
 0x7cc   : > { %p3833_p8 = scmp.ne.s32.totalorder %s5358_s17, %s3832_s25  ;;  %p3837_p11 = scmp.lt.s32.totalorder %s5358_s17, %s5435_s30 }
 0x7cd   : > { %p3838_p12 = scmp.lt.s32.totalorder %s3836_s21, %s3832_s25 }
 0x7ce   : > { %p3834_p9 = pnand %p3833_p8, %p4011_p5 }
 0x7cf   : > { %p3839_p13 = por %p3838_p12, %p3837_p11 }
 0x7d0   : > { %p3835_p10 = pneg %p3834_p9 }
 0x7d2   : > { %p3840_p0 = pnand %p3839_p13, %p3835_p10 }
 0x7d4   : > { %3843 = shalt.err (!%p3840_p0)
}
 0x7d5   : > { %3746 = dma.vmem_to_hbm [thread:$0]  (%p4011_p5), %s3104_s20, 16, %s5358_s17, %s3087_s1  }
 0x7d6 PF: > { %s5436_s27 = sld [smem:[#allocation10_spill]] }
 0x7d7   : > { %s5437_s29 = sld [smem:[#allocation8_spill]] }
 0x7dc   : > { %p3757_p1 = scmp.ge.s32.totalorder %s5436_s27, 2 }
 0x7dd   : > { %s3128_s28 = sand.u32 1, %s5437_s29  }
 0x7de   : > { %p3751_p2 = pnand %p3757_p1, %p4015_p6  ;;  %s3129_s26 = scalar_lea.sflag [#allocation3], %s3128_s28 }
 0x7e0   : > { %p3752_p3 = pneg %p3751_p2 }
 0x7e2   : > { %3861 = dma.done.wait (%p3752_p3), %s3129_s26, 16  }
 0x7e3   : > { %3863 = vsyncadd (%p3752_p3), %s3129_s26, 4294967280  ;;  %s3137_s10 = scalar_lea.sflag [#allocation5], %s3128_s28 }
 0x7e4   : > { %3865 = dma.done.wait (%p3752_p3), %s3137_s10, 16  }
 0x7e5   : > { %3867 = vsyncadd (%p3752_p3), %s3137_s10, 4294967280  ;;  %s5439_s24 = sld [smem:[#allocation11_spill]]  ;;  %s5442_s21 = smov %s3874_s22 }
 0x7e6   : > { %s5440_s0 = sld [smem:[#allocation9_spill]] }
 0x7e7   : > { %s5441_s23 = sld [smem:[#allocation12_spill]] }
 0x7eb   : > { %p30_p5 = scmp.ge.s32.totalorder %s5439_s24, 4  }
 0x7ec   : > { %s5443_s22 = smov %s5440_s0 }
 0x7ed   :  { %32 = sbr.rel (!%p30_p5) target bundleno = 10 (0xa), region = 148 }
 0x7f2   :  { %3141 = vsyncpa [#allocation3], 1 }
 0x7f3   :  { %3143 = vsyncpa [#allocation3 + $0x1], 1 }
 0x7f4   :  { %3144 = vsyncpa [#allocation5], 1 }
 0x7f5   :  { %3146 = vsyncpa [#allocation5 + $0x1], 1 }

</bundles_post_ra>
